<compile_context>
chip_gen: v5e
topology: v5e:2x2
jax: 0.10.0
libtpu: 0.0.40
codegen_flags: <defaults>
</compile_context>

<pallas_src>
import jax
import jax.numpy as jnp
from jax.experimental import pallas as pl
from jax.experimental.pallas import tpu as pltpu

HIDDEN = 400  # fixed by the PyTorch module (padded to 512 internally)


def _round_up(n, m):
    return (n + m - 1) // m * m


def _pick_batch_tile(B, block_rows):
    """Batch tile: big tiles for large B, >=2 grid steps for mid-size B (v7x has 2 TCs),
    and >=16 rows for tiny B so bf16 MXU operands fill the packed sublane layout."""
    if B >= 2 * block_rows:
        return block_rows
    if B > 256:
        return min(block_rows, _round_up(pl.cdiv(B, 2), 128))
    return max(16, _round_up(B, 16))


def _make_vae_kernel(num_latent, packed_head, l_pad):
    def kernel(x_ref, eps_ref,
               w1_ref, b1_ref,
               wm_ref, bm_ref,
               w3_ref, b3_ref,
               w4_ref, b4_ref,
               recon_ref, musig_ref):
        # ---- encode: h1 = relu(x @ W1 + b1) ----  (x arrives bf16; accumulate f32)
        h1 = jnp.dot(x_ref[...], w1_ref[...],
                     preferred_element_type=jnp.float32) + b1_ref[...]
        h1 = jnp.maximum(h1, 0.0)
        # TODO(synk): nn.Dropout(p=0.25) is identity in eval mode; a training-mode stochastic
        #             mask (pltpu.prng_seed/prng_random_bits) is not implemented here.

        # ---- fused mu/logvar head: one lane-dense matmul ----
        musig = jnp.dot(h1.astype(jnp.bfloat16), wm_ref[...],
                        preferred_element_type=jnp.float32) + bm_ref[...]
        musig_ref[...] = musig.astype(musig_ref.dtype)

        eps = eps_ref[...].astype(jnp.float32)
        if packed_head:
            # musig lanes [0:L) = mu, [L:2L) = logvar; eps arrives pre-shifted to lanes [L:2L).
            # Build v = [mu | eps*std | 0...].  fc3's packed weights duplicate w3 on rows
            # [0:L) and [L:2L), so v @ w3_packed == (mu + eps*std) @ w3 == z @ w3, with the
            # reparameterized sum taken in the f32 MXU accumulator (no cross-lane shuffle).
            lane = jax.lax.broadcasted_iota(jnp.int32, musig.shape, 1)
            v = jnp.where(lane < num_latent, musig, eps * jnp.exp(0.5 * musig))
        else:
            # Wide-latent fallback: lane-aligned split at l_pad, explicit z, masked pad lanes.
            mu = musig[:, :l_pad]
            logvar = musig[:, l_pad:]
            z = eps * jnp.exp(0.5 * logvar) + mu
            lane = jax.lax.broadcasted_iota(jnp.int32, z.shape, 1)
            v = jnp.where(lane < num_latent, z, 0.0)

        # ---- decode: recon = fc4(relu(fc3(v))) ----
        h3 = jnp.dot(v.astype(jnp.bfloat16), w3_ref[...],
                     preferred_element_type=jnp.float32) + b3_ref[...]
        h3 = jnp.maximum(h3, 0.0)
        recon = jnp.dot(h3.astype(jnp.bfloat16), w4_ref[...],
                        preferred_element_type=jnp.float32) + b4_ref[...]
        recon_ref[...] = recon.astype(recon_ref.dtype)

    return kernel


def init_vae_params(key, input_dim, num_latent, w_dtype=jnp.bfloat16):
    """PyTorch-Linear-style init U(-1/sqrt(fan_in), +1/sqrt(fan_in)).
    Returns (padded bf16 params for the kernel, raw f32 params for the reference).
    Kernel weights are stored (in_features, out_features) so y = x @ W + b."""
    D_pad = _round_up(input_dim, 128)
    H_pad = _round_up(HIDDEN, 128)            # 400 -> 512
    L_pad = _round_up(num_latent, 128)
    packed_head = (2 * num_latent) <= 128
    head_pad = 128 if packed_head else 2 * L_pad

    def linear(k, fan_in, fan_out):
        kw, kb = jax.random.split(k)
        bound = 1.0 / float(fan_in) ** 0.5
        w = jax.random.uniform(kw, (fan_in, fan_out), jnp.float32, -bound, bound)
        b = jax.random.uniform(kb, (1, fan_out), jnp.float32, -bound, bound)
        return w, b

    def pad2(a, rows, cols):
        return jnp.pad(a, ((0, rows - a.shape[0]), (0, cols - a.shape[1])))

    k1, k21, k22, k3, k4 = jax.random.split(key, 5)
    w1, b1 = linear(k1, input_dim, HIDDEN)
    w21, b21 = linear(k21, HIDDEN, num_latent)
    w22, b22 = linear(k22, HIDDEN, num_latent)
    w3, b3 = linear(k3, num_latent, HIDDEN)
    w4, b4 = linear(k4, HIDDEN, input_dim)

    if packed_head:
        # Packed head: mu in lanes [0:L), logvar in lanes [L:2L) of a single 128-lane block.
        wm = pad2(jnp.concatenate([w21, w22], axis=1), H_pad, head_pad)
        bm = pad2(jnp.concatenate([b21, b22], axis=1), 1, head_pad)
        # fc3 rows duplicated: rows [0:L) consume mu, rows [L:2L) consume eps*std.
        w3_body = pad2(w3, num_latent, H_pad)
        w3k = pad2(jnp.concatenate([w3_body, w3_body], axis=0), head_pad, H_pad)
    else:
        wm = pad2(jnp.concatenate([pad2(w21, HIDDEN, L_pad), pad2(w22, HIDDEN, L_pad)], axis=1),
                  H_pad, head_pad)
        bm = pad2(jnp.concatenate([pad2(b21, 1, L_pad), pad2(b22, 1, L_pad)], axis=1), 1, head_pad)
        w3k = pad2(w3, L_pad, H_pad)

    params = {
        "w1": pad2(w1, D_pad, H_pad).astype(w_dtype), "b1": pad2(b1, 1, H_pad),
        "w_musig": wm.astype(w_dtype), "b_musig": bm,
        "w3": w3k.astype(w_dtype), "b3": pad2(b3, 1, H_pad),
        "w4": pad2(w4, H_pad, D_pad).astype(w_dtype), "b4": pad2(b4, 1, D_pad),
    }
    raw = {"w1": w1, "b1": b1, "w21": w21, "b21": b21, "w22": w22, "b22": b22,
           "w3": w3, "b3": b3, "w4": w4, "b4": b4}
    return params, raw


def vae_forward(params, x, eps, *, block_rows=512):
    """Tiled Pallas VAE forward.  x: (B, input_dim), eps: (B, num_latent).  Returns f32 outputs."""
    B, input_dim = x.shape
    num_latent = eps.shape[1]
    D_pad, H_pad = params["w1"].shape
    head_pad = params["w_musig"].shape[1]
    packed_head = (2 * num_latent) <= 128
    assert head_pad == (128 if packed_head else 2 * _round_up(num_latent, 128))
    l_pad = head_pad if packed_head else head_pad // 2      # width of the fc3-input / eps block

    block_rows = max(128, _round_up(block_rows, 128))
    TB = _pick_batch_tile(B, block_rows)
    B_pad = _round_up(B, TB)

    # Activation I/O in bf16 (halves HBM traffic; accumulation stays f32 in-kernel).
    xp = jnp.pad(x, ((0, B_pad - B), (0, D_pad - input_dim))).astype(jnp.bfloat16)
    if packed_head:
        # eps pre-shifted into lanes [num_latent : 2*num_latent) to line up with logvar lanes.
        epsp = jnp.pad(eps, ((0, B_pad - B), (num_latent, l_pad - 2 * num_latent)))
    else:
        epsp = jnp.pad(eps, ((0, B_pad - B), (0, l_pad - num_latent)))
    epsp = epsp.astype(jnp.bfloat16)

    grid = (B_pad // TB,)

    def row_spec(cols):
        return pl.BlockSpec((TB, cols), lambda i: (i, 0))

    def const_spec(arr):
        # Constant index_map -> weights/biases stay resident in VMEM across grid steps.
        return pl.BlockSpec(arr.shape, lambda i: (0, 0))

    in_specs = [
        row_spec(D_pad),                     # x (bf16)
        row_spec(l_pad),                     # eps (bf16, pre-shifted when packed)
        const_spec(params["w1"]), const_spec(params["b1"]),
        const_spec(params["w_musig"]), const_spec(params["b_musig"]),
        const_spec(params["w3"]), const_spec(params["b3"]),
        const_spec(params["w4"]), const_spec(params["b4"]),
    ]
    out_specs = (row_spec(D_pad), row_spec(head_pad))
    out_shapes = (
        jax.ShapeDtypeStruct((B_pad, D_pad), jnp.float32),      # recon (padded)
        jax.ShapeDtypeStruct((B_pad, head_pad), jnp.float32),   # packed [mu | logvar] (padded)
    )

    k3_rows = params["w3"].shape[0]
    flops = 2 * B_pad * (D_pad * H_pad + H_pad * head_pad + k3_rows * H_pad + H_pad * D_pad)
    weight_bytes = sum(int(params[k].size) * params[k].dtype.itemsize
                       for k in ("w1", "b1", "w_musig", "b_musig", "w3", "b3", "w4", "b4"))
    bytes_accessed = (xp.size + epsp.size) * 2 + weight_bytes \
        + (B_pad * D_pad + B_pad * head_pad) * 4
    cost = pl.CostEstimate(flops=int(flops), transcendentals=int(B_pad * head_pad),
                           bytes_accessed=int(bytes_accessed))

    recon_p, musig_p = pl.pallas_call(
        _make_vae_kernel(num_latent, packed_head, head_pad // 2),
        out_shape=out_shapes,
        grid=grid,
        in_specs=in_specs,
        out_specs=out_specs,
        compiler_params=pltpu.CompilerParams(
            dimension_semantics=("parallel",),
            # v5e's scoped-VMEM default is only 16 MiB; be explicit so larger batch tiles compile.
            vmem_limit_bytes=32 * 1024 * 1024),
        cost_estimate=cost,
    )(xp, epsp,
      params["w1"], params["b1"],
      params["w_musig"], params["b_musig"],
      params["w3"], params["b3"],
      params["w4"], params["b4"])

    recon = recon_p[:B, :input_dim]
    if packed_head:
        mu = musig_p[:B, :num_latent]
        logvar = musig_p[:B, num_latent:2 * num_latent]
    else:
        mu = musig_p[:B, :num_latent]
        logvar = musig_p[:B, head_pad // 2: head_pad // 2 + num_latent]
    return recon, mu, logvar


def vae_reference(raw, x, eps):
    """Canonical pure-JAX f32 reference with the unpadded weights."""
    relu = lambda a: jnp.maximum(a, 0.0)
    h1 = relu(x @ raw["w1"] + raw["b1"])
    mu = h1 @ raw["w21"] + raw["b21"]
    logvar = h1 @ raw["w22"] + raw["b22"]
    z = eps * jnp.exp(0.5 * logvar) + mu
    h3 = relu(z @ raw["w3"] + raw["b3"])
    recon = h3 @ raw["w4"] + raw["b4"]
    return recon, mu, logvar


if __name__ == "__main__":
    key = jax.random.PRNGKey(0)
    k_params, k_x, k_eps = jax.random.split(key, 3)

    # Small, self-consistent shapes: batch=8, input_dim=256, num_latent=16, hidden=400 (fixed).
    B, INPUT_DIM, NUM_LATENT = 8, 256, 16

    params, raw = init_vae_params(k_params, INPUT_DIM, NUM_LATENT)
    x = jax.random.normal(k_x, (B, INPUT_DIM), jnp.float32)
    eps = jax.random.normal(k_eps, (B, NUM_LATENT), jnp.float32)   # deterministic eps

    recon, mu, logvar = vae_forward(params, x, eps)
    jax.block_until_ready((recon, mu, logvar))

    # Verify against the canonical f32 reference.  Tolerance is loose enough for the kernel's
    # bf16 matmul operands (estimated error <~1e-2) but catches any packing/layout mistake.
    r_ref, m_ref, lv_ref = vae_reference(raw, x, eps)
    assert recon.shape == (B, INPUT_DIM)
    assert mu.shape == (B, NUM_LATENT) and logvar.shape == (B, NUM_LATENT)
    assert jnp.allclose(mu, m_ref, atol=5e-2, rtol=5e-2), float(jnp.max(jnp.abs(mu - m_ref)))
    assert jnp.allclose(logvar, lv_ref, atol=5e-2, rtol=5e-2), float(jnp.max(jnp.abs(logvar - lv_ref)))
    assert jnp.allclose(recon, r_ref, atol=5e-2, rtol=5e-2), float(jnp.max(jnp.abs(recon - r_ref)))

    print("KERNEL_OK")
</pallas_src>

<mosaic_0001>
module attributes {stable_mosaic.version = 11 : i64} {
  func.func @kernel(%arg0: i32, %arg1: memref<16x256xbf16, #tpu.memory_space<vmem>>, %arg2: memref<16x128xbf16, #tpu.memory_space<vmem>>, %arg3: memref<256x512xbf16, #tpu.memory_space<vmem>>, %arg4: memref<1x512xf32, #tpu.memory_space<vmem>>, %arg5: memref<512x128xbf16, #tpu.memory_space<vmem>>, %arg6: memref<1x128xf32, #tpu.memory_space<vmem>>, %arg7: memref<128x512xbf16, #tpu.memory_space<vmem>>, %arg8: memref<1x512xf32, #tpu.memory_space<vmem>>, %arg9: memref<512x256xbf16, #tpu.memory_space<vmem>>, %arg10: memref<1x256xf32, #tpu.memory_space<vmem>>, %arg11: memref<16x256xf32, #tpu.memory_space<vmem>>, %arg12: memref<16x128xf32, #tpu.memory_space<vmem>>) attributes {dimension_semantics = [#tpu.dimension_semantics<parallel>], iteration_bounds = array<i64: 1>, scalar_prefetch = 0 : i64, scratch_operands = 0 : i64, tpu.core_type = #tpu.core_type<tc>, window_params = [{transform_indices = @transform_0, window_bounds = array<i64: 16, 256>}, {transform_indices = @transform_1, window_bounds = array<i64: 16, 128>}, {pipeline_mode = #tpu.pipeline_mode<synchronous>, transform_indices = @transform_2, window_bounds = array<i64: 256, 512>}, {pipeline_mode = #tpu.pipeline_mode<synchronous>, transform_indices = @transform_3, window_bounds = array<i64: 1, 512>}, {pipeline_mode = #tpu.pipeline_mode<synchronous>, transform_indices = @transform_4, window_bounds = array<i64: 512, 128>}, {pipeline_mode = #tpu.pipeline_mode<synchronous>, transform_indices = @transform_5, window_bounds = array<i64: 1, 128>}, {pipeline_mode = #tpu.pipeline_mode<synchronous>, transform_indices = @transform_6, window_bounds = array<i64: 128, 512>}, {pipeline_mode = #tpu.pipeline_mode<synchronous>, transform_indices = @transform_7, window_bounds = array<i64: 1, 512>}, {pipeline_mode = #tpu.pipeline_mode<synchronous>, transform_indices = @transform_8, window_bounds = array<i64: 512, 256>}, {pipeline_mode = #tpu.pipeline_mode<synchronous>, transform_indices = @transform_9, window_bounds = array<i64: 1, 256>}, {transform_indices = @transform_10, window_bounds = array<i64: 16, 256>}, {transform_indices = @transform_11, window_bounds = array<i64: 16, 128>}]} {
    %c0 = arith.constant 0 : index
    %c0_0 = arith.constant 0 : index
    %0 = vector.load %arg1[%c0, %c0_0] : memref<16x256xbf16, #tpu.memory_space<vmem>>, vector<16x256xbf16>
    %c0_1 = arith.constant 0 : index
    %c0_2 = arith.constant 0 : index
    %1 = vector.load %arg3[%c0_1, %c0_2] : memref<256x512xbf16, #tpu.memory_space<vmem>>, vector<256x512xbf16>
    %cst = arith.constant dense<0.000000e+00> : vector<16x512xf32>
    %2 = tpu.matmul %0, %1, %cst {dimension_numbers = #tpu.dot_dimension_numbers<[1], [0], [0], [1], [0, 0, 1, 1], [], []>} : vector<16x256xbf16>, vector<256x512xbf16>, vector<16x512xf32> -> vector<16x512xf32>
    %c0_3 = arith.constant 0 : index
    %c0_4 = arith.constant 0 : index
    %3 = vector.load %arg4[%c0_3, %c0_4] : memref<1x512xf32, #tpu.memory_space<vmem>>, vector<1x512xf32>
    %4 = vector.broadcast %3 : vector<1x512xf32> to vector<16x512xf32>
    %5 = arith.addf %2, %4 : vector<16x512xf32>
    %cst_5 = arith.constant 0.000000e+00 : f32
    %6 = vector.broadcast %cst_5 : f32 to vector<16x512xf32>
    %7 = arith.maximumf %5, %6 : vector<16x512xf32>
    %8 = arith.truncf %7 : vector<16x512xf32> to vector<16x512xbf16>
    %c0_6 = arith.constant 0 : index
    %c0_7 = arith.constant 0 : index
    %9 = vector.load %arg5[%c0_6, %c0_7] : memref<512x128xbf16, #tpu.memory_space<vmem>>, vector<512x128xbf16>
    %cst_8 = arith.constant dense<0.000000e+00> : vector<16x128xf32>
    %10 = tpu.matmul %8, %9, %cst_8 {dimension_numbers = #tpu.dot_dimension_numbers<[1], [0], [0], [1], [0, 0, 1, 1], [], []>} : vector<16x512xbf16>, vector<512x128xbf16>, vector<16x128xf32> -> vector<16x128xf32>
    %c0_9 = arith.constant 0 : index
    %c0_10 = arith.constant 0 : index
    %11 = vector.load %arg6[%c0_9, %c0_10] : memref<1x128xf32, #tpu.memory_space<vmem>>, vector<1x128xf32>
    %12 = vector.broadcast %11 : vector<1x128xf32> to vector<16x128xf32>
    %13 = arith.addf %10, %12 : vector<16x128xf32>
    %c0_11 = arith.constant 0 : index
    %c0_12 = arith.constant 0 : index
    %14 = vector.load %arg12[%c0_11, %c0_12] : memref<16x128xf32, #tpu.memory_space<vmem>>, vector<16x128xf32>
    tpu.vector_store %arg12[%c0_11, %c0_12], %13 {strides = array<i32>} : memref<16x128xf32, #tpu.memory_space<vmem>>, vector<16x128xf32>,
    %c0_13 = arith.constant 0 : index
    %c0_14 = arith.constant 0 : index
    %15 = vector.load %arg2[%c0_13, %c0_14] : memref<16x128xbf16, #tpu.memory_space<vmem>>, vector<16x128xbf16>
    %16 = arith.extf %15 : vector<16x128xbf16> to vector<16x128xf32>
    %17 = tpu.iota {dimensions = array<i32: 1>} : vector<16x128xi32>
    %c16_i32 = arith.constant 16 : i32
    %18 = vector.broadcast %c16_i32 : i32 to vector<16x128xi32>
    %19 = arith.cmpi slt, %17, %18 : vector<16x128xi32>
    %cst_15 = arith.constant 5.000000e-01 : f32
    %20 = vector.broadcast %cst_15 : f32 to vector<16x128xf32>
    %21 = arith.mulf %20, %13 : vector<16x128xf32>
    %22 = math.exp %21 : vector<16x128xf32>
    %23 = arith.mulf %16, %22 : vector<16x128xf32>
    %24 = arith.select %19, %13, %23 : vector<16x128xi1>, vector<16x128xf32>
    %25 = arith.truncf %24 : vector<16x128xf32> to vector<16x128xbf16>
    %c0_16 = arith.constant 0 : index
    %c0_17 = arith.constant 0 : index
    %26 = vector.load %arg7[%c0_16, %c0_17] : memref<128x512xbf16, #tpu.memory_space<vmem>>, vector<128x512xbf16>
    %cst_18 = arith.constant dense<0.000000e+00> : vector<16x512xf32>
    %27 = tpu.matmul %25, %26, %cst_18 {dimension_numbers = #tpu.dot_dimension_numbers<[1], [0], [0], [1], [0, 0, 1, 1], [], []>} : vector<16x128xbf16>, vector<128x512xbf16>, vector<16x512xf32> -> vector<16x512xf32>
    %c0_19 = arith.constant 0 : index
    %c0_20 = arith.constant 0 : index
    %28 = vector.load %arg8[%c0_19, %c0_20] : memref<1x512xf32, #tpu.memory_space<vmem>>, vector<1x512xf32>
    %29 = vector.broadcast %28 : vector<1x512xf32> to vector<16x512xf32>
    %30 = arith.addf %27, %29 : vector<16x512xf32>
    %cst_21 = arith.constant 0.000000e+00 : f32
    %31 = vector.broadcast %cst_21 : f32 to vector<16x512xf32>
    %32 = arith.maximumf %30, %31 : vector<16x512xf32>
    %33 = arith.truncf %32 : vector<16x512xf32> to vector<16x512xbf16>
    %c0_22 = arith.constant 0 : index
    %c0_23 = arith.constant 0 : index
    %34 = vector.load %arg9[%c0_22, %c0_23] : memref<512x256xbf16, #tpu.memory_space<vmem>>, vector<512x256xbf16>
    %cst_24 = arith.constant dense<0.000000e+00> : vector<16x256xf32>
    %35 = tpu.matmul %33, %34, %cst_24 {dimension_numbers = #tpu.dot_dimension_numbers<[1], [0], [0], [1], [0, 0, 1, 1], [], []>} : vector<16x512xbf16>, vector<512x256xbf16>, vector<16x256xf32> -> vector<16x256xf32>
    %c0_25 = arith.constant 0 : index
    %c0_26 = arith.constant 0 : index
    %36 = vector.load %arg10[%c0_25, %c0_26] : memref<1x256xf32, #tpu.memory_space<vmem>>, vector<1x256xf32>
    %37 = vector.broadcast %36 : vector<1x256xf32> to vector<16x256xf32>
    %38 = arith.addf %35, %37 : vector<16x256xf32>
    %c0_27 = arith.constant 0 : index
    %c0_28 = arith.constant 0 : index
    %39 = vector.load %arg11[%c0_27, %c0_28] : memref<16x256xf32, #tpu.memory_space<vmem>>, vector<16x256xf32>
    tpu.vector_store %arg11[%c0_27, %c0_28], %38 {strides = array<i32>} : memref<16x256xf32, #tpu.memory_space<vmem>>, vector<16x256xf32>,
    return
  }
  func.func @transform_0(%arg0: i32) -> (i32, i32) {
    %c0_i32 = arith.constant 0 : i32
    %c0_i32_0 = arith.constant 0 : i32
    return %arg0, %c0_i32 : i32, i32
  }
  func.func @transform_1(%arg0: i32) -> (i32, i32) {
    %c0_i32 = arith.constant 0 : i32
    %c0_i32_0 = arith.constant 0 : i32
    return %arg0, %c0_i32 : i32, i32
  }
  func.func @transform_2(%arg0: i32) -> (i32, i32) {
    %c0_i32 = arith.constant 0 : i32
    %c0_i32_0 = arith.constant 0 : i32
    %c0_i32_1 = arith.constant 0 : i32
    return %c0_i32, %c0_i32_0 : i32, i32
  }
  func.func @transform_3(%arg0: i32) -> (i32, i32) {
    %c0_i32 = arith.constant 0 : i32
    %c0_i32_0 = arith.constant 0 : i32
    %c0_i32_1 = arith.constant 0 : i32
    return %c0_i32, %c0_i32_0 : i32, i32
  }
  func.func @transform_4(%arg0: i32) -> (i32, i32) {
    %c0_i32 = arith.constant 0 : i32
    %c0_i32_0 = arith.constant 0 : i32
    %c0_i32_1 = arith.constant 0 : i32
    return %c0_i32, %c0_i32_0 : i32, i32
  }
  func.func @transform_5(%arg0: i32) -> (i32, i32) {
    %c0_i32 = arith.constant 0 : i32
    %c0_i32_0 = arith.constant 0 : i32
    %c0_i32_1 = arith.constant 0 : i32
    return %c0_i32, %c0_i32_0 : i32, i32
  }
  func.func @transform_6(%arg0: i32) -> (i32, i32) {
    %c0_i32 = arith.constant 0 : i32
    %c0_i32_0 = arith.constant 0 : i32
    %c0_i32_1 = arith.constant 0 : i32
    return %c0_i32, %c0_i32_0 : i32, i32
  }
  func.func @transform_7(%arg0: i32) -> (i32, i32) {
    %c0_i32 = arith.constant 0 : i32
    %c0_i32_0 = arith.constant 0 : i32
    %c0_i32_1 = arith.constant 0 : i32
    return %c0_i32, %c0_i32_0 : i32, i32
  }
  func.func @transform_8(%arg0: i32) -> (i32, i32) {
    %c0_i32 = arith.constant 0 : i32
    %c0_i32_0 = arith.constant 0 : i32
    %c0_i32_1 = arith.constant 0 : i32
    return %c0_i32, %c0_i32_0 : i32, i32
  }
  func.func @transform_9(%arg0: i32) -> (i32, i32) {
    %c0_i32 = arith.constant 0 : i32
    %c0_i32_0 = arith.constant 0 : i32
    %c0_i32_1 = arith.constant 0 : i32
    return %c0_i32, %c0_i32_0 : i32, i32
  }
  func.func @transform_10(%arg0: i32) -> (i32, i32) {
    %c0_i32 = arith.constant 0 : i32
    %c0_i32_0 = arith.constant 0 : i32
    return %arg0, %c0_i32 : i32, i32
  }
  func.func @transform_11(%arg0: i32) -> (i32, i32) {
    %c0_i32 = arith.constant 0 : i32
    %c0_i32_0 = arith.constant 0 : i32
    return %arg0, %c0_i32 : i32, i32
  }
}

</mosaic_0001>

<bundles_post_ra>
// kernel: tpu_custom_call.1
= control target key start
LH: loop header
LB: loop body
LE: loop exit
PB: predicated region body
PF: predicated region fallthrough
CT: control target
= control target key end

     0   :  { %17 = vsyncpa [#allocation3], 0  ;;  %s3260_s0 = inlined_call_operand.hbm [shape: bf16[16,256], index: 0, kind: input, shape index: {}]   ;;  %s3261_s1 = inlined_call_operand.hbm [shape: bf16[16,128], index: 1, kind: input, shape index: {}]   ;;  %s3262_s2 = inlined_call_operand.hbm [shape: bf16[256,512], index: 2, kind: input, shape index: {}]   ;;  %s3263_s3 = inlined_call_operand.hbm [shape: f32[1,512], index: 3, kind: input, shape index: {}]   ;;  %s3264_s4 = inlined_call_operand.hbm [shape: bf16[512,128], index: 4, kind: input, shape index: {}]   ;;  %s3265_s5 = inlined_call_operand.hbm [shape: f32[1,128], index: 5, kind: input, shape index: {}]   ;;  %s3266_s6 = inlined_call_operand.hbm [shape: bf16[128,512], index: 6, kind: input, shape index: {}]   ;;  %s3267_s7 = inlined_call_operand.vmem [shape: f32[1,512], index: 7, kind: input, shape index: {}]   ;;  %s3268_s8 = inlined_call_operand.hbm [shape: bf16[512,256], index: 8, kind: input, shape index: {}]   ;;  %s3269_s9 = inlined_call_operand.vmem [shape: f32[1,256], index: 9, kind: input, shape index: {}]   ;;  %s3270_s10 = inlined_call_operand.hbm [shape: f32[16,256], index: 10, kind: output, shape index: {0}]   ;;  %s3271_s11 = inlined_call_operand.hbm [shape: f32[16,128], index: 11, kind: output, shape index: {1}]  }
   0x1   :  { %18 = vsyncpa [#allocation6], 0 }
   0x2   :  { %19 = vsyncpa [#allocation9], 0 }
   0x3   :  { %20 = vsyncpa [#allocation12], 0 }
   0x4   :  { %21 = vsyncpa [#allocation15], 0 }
   0x5   :  { %22 = vsyncpa [#allocation4], 0  ;;  %s41_s19 = sshll.u32 %s3261_s1, 4  ;;  %s42_s19 = int_to_ptr.hbm [resolvable:$true] %s41_s19 }
   0x6   :  { %23 = vsyncpa [#allocation18], 0  ;;  %s3092_s20 = smov [#allocation5]   ;;  %s68_s24 = sshll.u32 %s3263_s3, 4  ;;  %s69_s24 = int_to_ptr.hbm [resolvable:$true] %s68_s24 }
   0x7   :  { %s43_s21 = sshll.u32 %s3092_s20, 4  ;;  %s3093_s25 = smov 64   ;;  %s44_s21 = int_to_ptr.vmem [resolvable:$true] %s43_s21 }
   0x8   :  { %s3094_s26 = smov 4   ;;  %s3095_s27 = smov [#allocation8]  }
   0x9   :  { %49 = dma.hbm_to_vmem [thread:$0]  %s42_s19, 128, %s44_s21, [#allocation6], %s3093_s25, %s3093_s25, %s3094_s26  }
   0xa   :  { %s70_s28 = sshll.u32 %s3095_s27, 4  ;;  %s92_s30 = sshll.u32 %s3265_s5, 4  ;;  %s71_s28 = int_to_ptr.vmem [resolvable:$true] %s70_s28  ;;  %s93_s30 = int_to_ptr.hbm [resolvable:$true] %s92_s30 }
   0xb   :  { %73 = dma.hbm_to_vmem [thread:$0]  %s69_s24, 64, %s71_s28, [#allocation9]  }
   0xc   :  { %s28_s3 = sshll.u32 %s3260_s0, 4  ;;  %s3096_s14 = smov [#allocation11]   ;;  %s29_s3 = int_to_ptr.hbm [resolvable:$true] %s28_s3 }
   0xd   :  { %s94_s15 = sshll.u32 %s3096_s14, 4  ;;  %s3097_s16 = smov [#allocation2]   ;;  %s95_s15 = int_to_ptr.vmem [resolvable:$true] %s94_s15 }
   0xe   :  { %97 = dma.hbm_to_vmem [thread:$0]  %s93_s30, 16, %s95_s15, [#allocation12]  }
   0xf   :  { %s30_s17 = sshll.u32 %s3097_s16, 4  ;;  %s3098_s18 = smov 128   ;;  %s31_s17 = int_to_ptr.vmem [resolvable:$true] %s30_s17 }
  0x10   :  { %s3099_s19 = smov 8   ;;  %s54_s21 = sshll.u32 %s3262_s2, 4  ;;  %s55_s21 = int_to_ptr.hbm [resolvable:$true] %s54_s21 }
  0x11   :  { %36 = dma.hbm_to_vmem [thread:$0]  %s29_s3, 256, %s31_s17, [#allocation3], %s3098_s18, %s3098_s18, %s3099_s19  }
  0x12   :  { %s3100_s0 = smov [#allocation7]   ;;  %s78_s27 = sshll.u32 %s3264_s4, 4  ;;  %s79_s27 = int_to_ptr.hbm [resolvable:$true] %s78_s27 }
  0x13   :  { %s56_s22 = sshll.u32 %s3100_s0, 4  ;;  %s3101_s28 = smov 256   ;;  %s57_s22 = int_to_ptr.vmem [resolvable:$true] %s56_s22 }
  0x14   :  { %s3102_s29 = smov 16   ;;  %s3103_s1 = smov [#allocation10]  }
  0x15   :  { %62 = dma.hbm_to_vmem [thread:$0]  %s55_s21, 8192, %s57_s22, [#allocation6], %s3101_s28, %s3101_s28, %s3102_s29  }
  0x16   :  { %s80_s30 = sshll.u32 %s3103_s1, 4  ;;  %s102_s2 = sshll.u32 %s3266_s6, 4  ;;  %s81_s30 = int_to_ptr.vmem [resolvable:$true] %s80_s30  ;;  %s103_s2 = int_to_ptr.hbm [resolvable:$true] %s102_s2 }
  0x17   :  { %86 = dma.hbm_to_vmem [thread:$0]  %s79_s27, 4096, %s81_s30, [#allocation9], %s3093_s25, %s3093_s25, %s3094_s26  }
  0x18   :  { %s117_s14 = sshll.u32 %s3268_s8, 4  ;;  %s3104_s15 = smov [#allocation13]   ;;  %s118_s14 = int_to_ptr.hbm [resolvable:$true] %s117_s14 }
  0x19   :  { %s104_s16 = sshll.u32 %s3104_s15, 4  ;;  %s3105_s17 = smov [#allocation14]   ;;  %s105_s16 = int_to_ptr.vmem [resolvable:$true] %s104_s16 }
  0x1a   :  { %110 = dma.hbm_to_vmem [thread:$0]  %s103_s2, 4096, %s105_s16, [#allocation12], %s3101_s28, %s3101_s28, %s3102_s29  }
  0x1b   :  { %s119_s6 = sshll.u32 %s3105_s17, 4  ;;  %s120_s6 = int_to_ptr.vmem [resolvable:$true] %s119_s6 }
  0x1c   :  { %125 = dma.hbm_to_vmem [thread:$0]  %s118_s14, 8192, %s120_s6, [#allocation15], %s3098_s18, %s3098_s18, %s3099_s19  }
  0x1d   :  { %3078 = dma.done.wait [#allocation3], 256  }
  0x1e   :  { %3079 = vsyncadd [#allocation3], 4294967040 }
  0x1f   :  { %3080 = dma.done.wait [#allocation6], 8320  }
  0x20   :  { %3081 = vsyncadd [#allocation6], 4294958976 }
  0x21   :  { %3082 = dma.done.wait [#allocation9], 4160  }
  0x22   :  { %3083 = vsyncadd [#allocation9], 4294963136 }
  0x23   :  { %3084 = dma.done.wait [#allocation12], 4112  }
  0x24   :  { %3085 = vsyncadd [#allocation12], 4294963184 }
  0x25   :  { %3086 = dma.done.wait [#allocation15], 8192  }
  0x26   :  { %3087 = vsyncadd [#allocation15], 4294959104  ;;  %v1965_v0 = vld [vmem:[#allocation7 + $0xe0] sm:$0xf]  ;;  %v2651_v1 = vld [vmem:[#allocation7 + $0xec] sm:$0xf0] }
  0x27   :  { %v2093_v2 = vld [vmem:[#allocation7 + $0x1e0] sm:$0xf]  ;;  %v1966_v3 = vor.u32 %v2651_v1, %v1965_v0  ;;  %v2683_v4 = vld [vmem:[#allocation7 + $0x1ec] sm:$0xf0]  ;;  %v2649_v5 = vld [vmem:[#allocation7 + $0xe4] sm:$0xf] }
  0x28   :  { %v1967_v6 = vld [vmem:[#allocation7 + $0xf0] sm:$0xf0]  ;;  %v2094_v7 = vor.u32 %v2683_v4, %v2093_v2  ;;  %v2681_v9 = vld [vmem:[#allocation7 + $0x1e4] sm:$0xf]  ;;  %v1949_v11 = vld [vmem:[#allocation7 + $0xc0] sm:$0xf] }
  0x29   :  { %v1970_v8 = vor.u32 %v2649_v5, %v1967_v6  ;;  %v2095_v10 = vld [vmem:[#allocation7 + $0x1f0] sm:$0xf0]  ;;  %566 = vmatpush.bf16.msra.mxu0 %v1966_v3  ;;  %v2647_v13 = vld [vmem:[#allocation7 + $0xcc] sm:$0xf0]  ;;  %v2077_v14 = vld [vmem:[#allocation7 + $0x1c0] sm:$0xf] }
  0x2a   :  { %v2098_v12 = vor.u32 %v2681_v9, %v2095_v10  ;;  %v2679_v15 = vld [vmem:[#allocation7 + $0x1cc] sm:$0xf0]  ;;  %580 = vmatpush.bf16.msra.mxu1 %v2094_v7  ;;  %v1950_v16 = vor.u32 %v2647_v13, %v1949_v11  ;;  %v2645_v18 = vld [vmem:[#allocation7 + $0xc4] sm:$0xf]  ;;  %v1951_v19 = vld [vmem:[#allocation7 + $0xd0] sm:$0xf0] }
  0x2b   :  { %594 = vmatpush.bf16.msra.mxu2 %v1970_v8  ;;  %v2078_v17 = vor.u32 %v2679_v15, %v2077_v14  ;;  %v2677_v20 = vld [vmem:[#allocation7 + $0x1c4] sm:$0xf]  ;;  %v1954_v21 = vor.u32 %v2645_v18, %v1951_v19  ;;  %v2079_v22 = vld [vmem:[#allocation7 + $0x1d0] sm:$0xf0]  ;;  %v1933_v23 = vld [vmem:[#allocation7 + $0xa0] sm:$0xf] }
  0x2c   :  { %608 = vmatpush.bf16.msra.mxu3 %v2098_v12  ;;  %v2643_v24 = vld [vmem:[#allocation7 + $0xac] sm:$0xf0]  ;;  %v2082_v25 = vor.u32 %v2677_v20, %v2079_v22  ;;  %v2061_v26 = vld [vmem:[#allocation7 + $0x1a0] sm:$0xf]  ;;  %v2641_v28 = vld [vmem:[#allocation7 + $0xa4] sm:$0xf] }
  0x2d   :  { %v2675_v27 = vld [vmem:[#allocation7 + $0x1ac] sm:$0xf0]  ;;  %567 = vmatpush.bf16.msra.mxu0 %v1950_v16  ;;  %v1934_v29 = vor.u32 %v2643_v24, %v1933_v23  ;;  %v1935_v30 = vld [vmem:[#allocation7 + $0xb0] sm:$0xf0]  ;;  %v2673_v31 = vld [vmem:[#allocation7 + $0x1a4] sm:$0xf] }
  0x2e   :  { %v2063_v32 = vld [vmem:[#allocation7 + $0x1b0] sm:$0xf0]  ;;  %581 = vmatpush.bf16.msra.mxu1 %v2078_v17  ;;  %v2062_v33 = vor.u32 %v2675_v27, %v2061_v26  ;;  %v1938_v34 = vor.u32 %v2641_v28, %v1935_v30  ;;  %v1917_v35 = vld [vmem:[#allocation7 + $0x80] sm:$0xf]  ;;  %v2639_v36 = vld [vmem:[#allocation7 + $0x8c] sm:$0xf0] }
  0x2f   :  { %595 = vmatpush.bf16.msra.mxu2 %v1954_v21  ;;  %v2045_v37 = vld [vmem:[#allocation7 + $0x180] sm:$0xf]  ;;  %v2066_v38 = vor.u32 %v2673_v31, %v2063_v32  ;;  %v2671_v39 = vld [vmem:[#allocation7 + $0x18c] sm:$0xf0]  ;;  %v2637_v40 = vld [vmem:[#allocation7 + $0x84] sm:$0xf]  ;;  %v1918_v44 = vor.u32 %v2639_v36, %v1917_v35 }
  0x30   :  { %609 = vmatpush.bf16.msra.mxu3 %v2082_v25  ;;  %v1919_v41 = vld [vmem:[#allocation7 + $0x90] sm:$0xf0]  ;;  %v2669_v42 = vld [vmem:[#allocation7 + $0x184] sm:$0xf]  ;;  %v2046_v45 = vor.u32 %v2671_v39, %v2045_v37  ;;  %v1901_v47 = vld [vmem:[#allocation7 + $0x60] sm:$0xf] }
  0x31   :  { %v2047_v43 = vld [vmem:[#allocation7 + $0x190] sm:$0xf0]  ;;  %568 = vmatpush.bf16.msra.mxu0 %v1934_v29  ;;  %v1922_v46 = vor.u32 %v2637_v40, %v1919_v41  ;;  %v2635_v48 = vld [vmem:[#allocation7 + $0x6c] sm:$0xf0]  ;;  %v2029_v49 = vld [vmem:[#allocation7 + $0x160] sm:$0xf] }
  0x32   :  { %582 = vmatpush.bf16.msra.mxu1 %v2062_v33  ;;  %v2050_v50 = vor.u32 %v2669_v42, %v2047_v43  ;;  %v2667_v51 = vld [vmem:[#allocation7 + $0x16c] sm:$0xf0]  ;;  %v2633_v52 = vld [vmem:[#allocation7 + $0x64] sm:$0xf]  ;;  %v1903_v53 = vld [vmem:[#allocation7 + $0x70] sm:$0xf0]  ;;  %v1902_v56 = vor.u32 %v2635_v48, %v1901_v47 }
  0x33   :  { %596 = vmatpush.bf16.msra.mxu2 %v1938_v34  ;;  %v2665_v54 = vld [vmem:[#allocation7 + $0x164] sm:$0xf]  ;;  %v2031_v55 = vld [vmem:[#allocation7 + $0x170] sm:$0xf0]  ;;  %v2030_v57 = vor.u32 %v2667_v51, %v2029_v49  ;;  %v1906_v58 = vor.u32 %v2633_v52, %v1903_v53  ;;  %v1885_v59 = vld [vmem:[#allocation7 + $0x40] sm:$0xf] }
  0x34   :  { %610 = vmatpush.bf16.msra.mxu3 %v2066_v38  ;;  %v2631_v60 = vld [vmem:[#allocation7 + $0x4c] sm:$0xf0]  ;;  %v2013_v61 = vld [vmem:[#allocation7 + $0x140] sm:$0xf]  ;;  %v2034_v62 = vor.u32 %v2665_v54, %v2031_v55  ;;  %v2629_v0 = vld [vmem:[#allocation7 + $0x44] sm:$0xf] }
  0x35   :  { %569 = vmatpush.bf16.msra.mxu0 %v1918_v44  ;;  %v2663_v63 = vld [vmem:[#allocation7 + $0x14c] sm:$0xf0]  ;;  %v1887_v1 = vld [vmem:[#allocation7 + $0x50] sm:$0xf0]  ;;  %v2661_v2 = vld [vmem:[#allocation7 + $0x144] sm:$0xf]  ;;  %v1886_v4 = vor.u32 %v2631_v60, %v1885_v59 }
  0x36   :  { %583 = vmatpush.bf16.msra.mxu1 %v2046_v45  ;;  %v2015_v3 = vld [vmem:[#allocation7 + $0x150] sm:$0xf0]  ;;  %v2014_v5 = vor.u32 %v2663_v63, %v2013_v61  ;;  %v1890_v6 = vor.u32 %v2629_v0, %v1887_v1  ;;  %v1869_v7 = vld [vmem:[#allocation7 + $0x20] sm:$0xf]  ;;  %v2627_v8 = vld [vmem:[#allocation7 + $0x2c] sm:$0xf0] }
  0x37   :  { %597 = vmatpush.bf16.msra.mxu2 %v1922_v46  ;;  %v1997_v9 = vld [vmem:[#allocation7 + $0x120] sm:$0xf]  ;;  %v2018_v10 = vor.u32 %v2661_v2, %v2015_v3  ;;  %v2659_v11 = vld [vmem:[#allocation7 + $0x12c] sm:$0xf0]  ;;  %v2625_v12 = vld [vmem:[#allocation7 + $0x24] sm:$0xf]  ;;  %v1870_v16 = vor.u32 %v2627_v8, %v1869_v7 }
  0x38   :  { %611 = vmatpush.bf16.msra.mxu3 %v2050_v50  ;;  %v1871_v13 = vld [vmem:[#allocation7 + $0x30] sm:$0xf0]  ;;  %v2657_v14 = vld [vmem:[#allocation7 + $0x124] sm:$0xf]  ;;  %v1853_v17 = vld [vmem:[#allocation7] sm:$0xf]  ;;  %v1998_v20 = vor.u32 %v2659_v11, %v1997_v9 }
  0x39   :  { %570 = vmatpush.bf16.msra.mxu0 %v1902_v56  ;;  %v1999_v15 = vld [vmem:[#allocation7 + $0x130] sm:$0xf0]  ;;  %v2623_v18 = vld [vmem:[#allocation7 + $0xc] sm:$0xf0]  ;;  %v1981_v19 = vld [vmem:[#allocation7 + $0x100] sm:$0xf]  ;;  %v1874_v21 = vor.u32 %v2625_v12, %v1871_v13 }
  0x3a   :  { %584 = vmatpush.bf16.msra.mxu1 %v2030_v57  ;;  %v2655_v22 = vld [vmem:[#allocation7 + $0x10c] sm:$0xf0]  ;;  %v2621_v23 = vld [vmem:[#allocation7 + $0x4] sm:$0xf]  ;;  %v1855_v24 = vld [vmem:[#allocation7 + $0x10] sm:$0xf0]  ;;  %v2002_v25 = vor.u32 %v2657_v14, %v1999_v15  ;;  %v1854_v32 = vor.u32 %v2623_v18, %v1853_v17 }
  0x3b   :  { %598 = vmatpush.bf16.msra.mxu2 %v1906_v58  ;;  %v2653_v26 = vld [vmem:[#allocation7 + $0x104] sm:$0xf]  ;;  %v1983_v27 = vld [vmem:[#allocation7 + $0x110] sm:$0xf0]  ;;  %v1973_v28 = vld [vmem:[#allocation7 + $0xe8] sm:$0xf]  ;;  %v1982_v36 = vor.u32 %v2655_v22, %v1981_v19  ;;  %v1858_v37 = vor.u32 %v2621_v23, %v1855_v24 }
  0x3c   :  { %612 = vmatpush.bf16.msra.mxu3 %v2034_v62  ;;  %v2652_v29 = vld [vmem:[#allocation7 + $0xf4] sm:$0xf0]  ;;  %v2101_v30 = vld [vmem:[#allocation7 + $0x1e8] sm:$0xf]  ;;  %v2650_v33 = vld [vmem:[#allocation7 + $0xec] sm:$0xf]  ;;  %v1986_v41 = vor.u32 %v2653_v26, %v1983_v27 }
  0x3d   :  { %571 = vmatpush.bf16.msra.mxu0 %v1886_v4  ;;  %v2684_v31 = vld [vmem:[#allocation7 + $0x1f4] sm:$0xf0]  ;;  %v1975_v34 = vld [vmem:[#allocation7 + $0xf8] sm:$0xf0]  ;;  %v2682_v35 = vld [vmem:[#allocation7 + $0x1ec] sm:$0xf]  ;;  %v1974_v42 = vor.u32 %v2652_v29, %v1973_v28 }
  0x3e   :  { %585 = vmatpush.bf16.msra.mxu1 %v2014_v5  ;;  %v2103_v38 = vld [vmem:[#allocation7 + $0x1f8] sm:$0xf0]  ;;  %v1845_v39 = vld [vmem:[#allocation2] sm:$0xf]  ;;  %v2620_v40 = vld [vmem:[#allocation2 + $0x4] sm:$0xf0]  ;;  %v2102_v45 = vor.u32 %v2684_v31, %v2101_v30  ;;  %v1978_v46 = vor.u32 %v2650_v33, %v1975_v34 }
  0x3f   :  { %599 = vmatpush.bf16.msra.mxu2 %v1890_v6  ;;  %v2619_v43 = vld [vmem:[#allocation2 + $0x4] sm:$0xf]  ;;  %v1847_v44 = vld [vmem:[#allocation2 + $0x8] sm:$0xf0]  ;;  %v1957_v47 = vld [vmem:[#allocation7 + $0xc8] sm:$0xf]  ;;  %v2106_v50 = vor.u32 %v2682_v35, %v2103_v38  ;;  %v3210_v51 = vor.u32 %v2620_v40, %v1845_v39 }
  0x40   :  { %613 = vmatpush.bf16.msra.mxu3 %v2018_v10  ;;  %v2648_v48 = vld [vmem:[#allocation7 + $0xd4] sm:$0xf0]  ;;  %v2085_v49 = vld [vmem:[#allocation7 + $0x1c8] sm:$0xf]  ;;  %v2646_v53 = vld [vmem:[#allocation7 + $0xcc] sm:$0xf]  ;;  %v3212_v55 = vor.u32 %v2619_v43, %v1847_v44 }
  0x41   :  { %572 = vmatpush.bf16.msra.mxu0 %v1870_v16  ;;  %v2680_v52 = vld [vmem:[#allocation7 + $0x1d4] sm:$0xf0]  ;;  %v1959_v54 = vld [vmem:[#allocation7 + $0xd8] sm:$0xf0]  ;;  %v2678_v56 = vld [vmem:[#allocation7 + $0x1cc] sm:$0xf]  ;;  %v1958_v58 = vor.u32 %v2648_v48, %v1957_v47 }
  0x42   :  { %586 = vmatpush.bf16.msra.mxu1 %v1998_v20  ;;  %v2087_v57 = vld [vmem:[#allocation7 + $0x1d8] sm:$0xf0]  ;;  %v2086_v59 = vor.u32 %v2680_v52, %v2085_v49  ;;  %v1962_v60 = vor.u32 %v2646_v53, %v1959_v54  ;;  %v1941_v61 = vld [vmem:[#allocation7 + $0xa8] sm:$0xf]  ;;  %v2644_v62 = vld [vmem:[#allocation7 + $0xb4] sm:$0xf0] }
  0x43   :  { %600 = vmatpush.bf16.msra.mxu2 %v1874_v21  ;;  %v2069_v63 = vld [vmem:[#allocation7 + $0x1a8] sm:$0xf]  ;;  %v2090_v0 = vor.u32 %v2678_v56, %v2087_v57  ;;  %v2676_v1 = vld [vmem:[#allocation7 + $0x1b4] sm:$0xf0]  ;;  %v2642_v2 = vld [vmem:[#allocation7 + $0xac] sm:$0xf]  ;;  %v1942_v6 = vor.u32 %v2644_v62, %v1941_v61 }
  0x44   :  { %614 = vmatpush.bf16.msra.mxu3 %v2002_v25  ;;  %v1943_v3 = vld [vmem:[#allocation7 + $0xb8] sm:$0xf0]  ;;  %v2674_v4 = vld [vmem:[#allocation7 + $0x1ac] sm:$0xf]  ;;  %v2070_v7 = vor.u32 %v2676_v1, %v2069_v63  ;;  %v1925_v9 = vld [vmem:[#allocation7 + $0x88] sm:$0xf] }
  0x45   :  { %573 = vmatpush.bf16.msra.mxu0 %v1854_v32  ;;  %v2071_v5 = vld [vmem:[#allocation7 + $0x1b8] sm:$0xf0]  ;;  %v1946_v8 = vor.u32 %v2642_v2, %v1943_v3  ;;  %v2640_v10 = vld [vmem:[#allocation7 + $0x94] sm:$0xf0]  ;;  %v2053_v11 = vld [vmem:[#allocation7 + $0x188] sm:$0xf] }
  0x46   :  { %587 = vmatpush.bf16.msra.mxu1 %v1982_v36  ;;  %v2074_v12 = vor.u32 %v2674_v4, %v2071_v5  ;;  %v2672_v13 = vld [vmem:[#allocation7 + $0x194] sm:$0xf0]  ;;  %v2638_v14 = vld [vmem:[#allocation7 + $0x8c] sm:$0xf]  ;;  %v1927_v15 = vld [vmem:[#allocation7 + $0x98] sm:$0xf0]  ;;  %v1926_v18 = vor.u32 %v2640_v10, %v1925_v9 }
  0x47   :  { %601 = vmatpush.bf16.msra.mxu2 %v1858_v37  ;;  %v2670_v16 = vld [vmem:[#allocation7 + $0x18c] sm:$0xf]  ;;  %v2055_v17 = vld [vmem:[#allocation7 + $0x198] sm:$0xf0]  ;;  %v2054_v19 = vor.u32 %v2672_v13, %v2053_v11  ;;  %v1930_v20 = vor.u32 %v2638_v14, %v1927_v15  ;;  %v1909_v21 = vld [vmem:[#allocation7 + $0x68] sm:$0xf] }
  0x48   :  { %615 = vmatpush.bf16.msra.mxu3 %v1986_v41  ;;  %574 = vmatmul.bf16.vlgmr.msra.gmra.mxu0 %v3210_v51  ;;  %v2636_v22 = vld [vmem:[#allocation7 + $0x74] sm:$0xf0]  ;;  %v2037_v23 = vld [vmem:[#allocation7 + $0x168] sm:$0xf]  ;;  %v2058_v24 = vor.u32 %v2670_v16, %v2055_v17  ;;  %v2634_v26 = vld [vmem:[#allocation7 + $0x6c] sm:$0xf] }
  0x49   :  { %622 = vmatpush.bf16.msrb.mxu0 %v1974_v42  ;;  %588 = vmatmul.bf16.vlgmr.msra.gmra.mxu1 %v3212_v55  ;;  %v2668_v25 = vld [vmem:[#allocation7 + $0x174] sm:$0xf0]  ;;  %v1911_v27 = vld [vmem:[#allocation7 + $0x78] sm:$0xf0]  ;;  %v2666_v28 = vld [vmem:[#allocation7 + $0x16c] sm:$0xf]  ;;  %v1910_v30 = vor.u32 %v2636_v22, %v1909_v21 }
  0x4a   :  { %636 = vmatpush.bf16.msrb.mxu1 %v2102_v45  ;;  %602 = vmatmul.bf16.vlgmr.msra.gmra.mxu2 %v3210_v51  ;;  %v2039_v29 = vld [vmem:[#allocation7 + $0x178] sm:$0xf0]  ;;  %v1893_v31 = vld [vmem:[#allocation7 + $0x48] sm:$0xf]  ;;  %v2038_v32 = vor.u32 %v2668_v25, %v2037_v23  ;;  %v1914_v33 = vor.u32 %v2634_v26, %v1911_v27  ;;  %v2632_v34 = vld [vmem:[#allocation7 + $0x54] sm:$0xf0] }
  0x4b   :  { %650 = vmatpush.bf16.msrb.mxu2 %v1978_v46  ;;  %616 = vmatmul.bf16.vlgmr.msra.gmra.mxu3 %v3212_v55  ;;  %v2021_v35 = vld [vmem:[#allocation7 + $0x148] sm:$0xf]  ;;  %v2042_v36 = vor.u32 %v2666_v28, %v2039_v29  ;;  %v2664_v37 = vld [vmem:[#allocation7 + $0x154] sm:$0xf0]  ;;  %v2630_v38 = vld [vmem:[#allocation7 + $0x4c] sm:$0xf]  ;;  %v1894_v42 = vor.u32 %v2632_v34, %v1893_v31 }
  0x4c   :  { %664 = vmatpush.bf16.msrb.mxu3 %v2106_v50  ;;  %v1895_v39 = vld [vmem:[#allocation7 + $0x58] sm:$0xf0]  ;;  %v2662_v40 = vld [vmem:[#allocation7 + $0x14c] sm:$0xf]  ;;  %v2022_v43 = vor.u32 %v2664_v37, %v2021_v35  ;;  %v1877_v45 = vld [vmem:[#allocation7 + $0x28] sm:$0xf] }
  0x4d   :  { %623 = vmatpush.bf16.msrb.mxu0 %v1958_v58  ;;  %v2023_v41 = vld [vmem:[#allocation7 + $0x158] sm:$0xf0]  ;;  %v1898_v44 = vor.u32 %v2630_v38, %v1895_v39  ;;  %v2628_v46 = vld [vmem:[#allocation7 + $0x34] sm:$0xf0]  ;;  %v2005_v47 = vld [vmem:[#allocation7 + $0x128] sm:$0xf] }
  0x4e   :  { %637 = vmatpush.bf16.msrb.mxu1 %v2086_v59  ;;  %v2026_v48 = vor.u32 %v2662_v40, %v2023_v41  ;;  %v2660_v49 = vld [vmem:[#allocation7 + $0x134] sm:$0xf0]  ;;  %v2626_v50 = vld [vmem:[#allocation7 + $0x2c] sm:$0xf]  ;;  %v1879_v52 = vld [vmem:[#allocation7 + $0x38] sm:$0xf0]  ;;  %v1878_v56 = vor.u32 %v2628_v46, %v1877_v45 }
  0x4f   :  { %651 = vmatpush.bf16.msrb.mxu2 %v1962_v60  ;;  %v2658_v53 = vld [vmem:[#allocation7 + $0x12c] sm:$0xf]  ;;  %v2007_v54 = vld [vmem:[#allocation7 + $0x138] sm:$0xf0]  ;;  %v2006_v57 = vor.u32 %v2660_v49, %v2005_v47  ;;  %v1882_v58 = vor.u32 %v2626_v50, %v1879_v52  ;;  %v1861_v59 = vld [vmem:[#allocation7 + $0x8] sm:$0xf] }
  0x50   :  { %665 = vmatpush.bf16.msrb.mxu3 %v2090_v0  ;;  %v2624_v60 = vld [vmem:[#allocation7 + $0x14] sm:$0xf0]  ;;  %v1989_v61 = vld [vmem:[#allocation7 + $0x108] sm:$0xf]  ;;  %v2010_v62 = vor.u32 %v2658_v53, %v2007_v54  ;;  %v2622_v0 = vld [vmem:[#allocation7 + $0xc] sm:$0xf] }
  0x51   :  { %624 = vmatpush.bf16.msrb.mxu0 %v1942_v6  ;;  %v2656_v63 = vld [vmem:[#allocation7 + $0x114] sm:$0xf0]  ;;  %v1863_v1 = vld [vmem:[#allocation7 + $0x18] sm:$0xf0]  ;;  %v2654_v2 = vld [vmem:[#allocation7 + $0x10c] sm:$0xf]  ;;  %v1862_v4 = vor.u32 %v2624_v60, %v1861_v59 }
  0x52   :  { %638 = vmatpush.bf16.msrb.mxu1 %v2070_v7  ;;  %v1991_v3 = vld [vmem:[#allocation7 + $0x118] sm:$0xf0]  ;;  %v1990_v5 = vor.u32 %v2656_v63, %v1989_v61  ;;  %v1866_v6 = vor.u32 %v2622_v0, %v1863_v1  ;;  %v2691_v10 = vld [vmem:[#allocation10 + $0x30] sm:$0xff]  ;;  %v2698_v13 = vld [vmem:[#allocation10 + $0x68] sm:$0xff]  ;;  %s1821_s21 = sshll.u32 %s3271_s11, 4  ;;  %s1808_s23 = sshll.u32 %s3270_s10, 4  ;;  %s1822_s21 = int_to_ptr.hbm [resolvable:$true] %s1821_s21  ;;  %s1809_s23 = int_to_ptr.hbm [resolvable:$true] %s1808_s23 }
  0x53   :  { %652 = vmatpush.bf16.msrb.mxu2 %v1946_v8  ;;  %v1994_v7 = vor.u32 %v2654_v2, %v1991_v3  ;;  %v2692_v8 = vld [vmem:[#allocation10 + $0x38] sm:$0xff]  ;;  %v2699_v11 = vld [vmem:[#allocation10 + $0x70] sm:$0xff]  ;;  %v2689_v14 = vld [vmem:[#allocation10 + $0x20] sm:$0xff] }
  0x54   :  { %666 = vmatpush.bf16.msrb.mxu3 %v2074_v12  ;;  %v2700_v9 = vld [vmem:[#allocation10 + $0x78] sm:$0xff]  ;;  %v2690_v12 = vld [vmem:[#allocation10 + $0x28] sm:$0xff]  ;;  %v2697_v16 = vld [vmem:[#allocation10 + $0x60] sm:$0xff] }
  0x55   :  { %625 = vmatpush.bf16.msrb.mxu0 %v1926_v18  ;;  %v2688_v15 = vld [vmem:[#allocation10 + $0x18] sm:$0xff]  ;;  %v2687_v17 = vld [vmem:[#allocation10 + $0x10] sm:$0xff]  ;;  %v2694_v21 = vld [vmem:[#allocation10 + $0x48] sm:$0xff] }
  0x56   :  { %639 = vmatpush.bf16.msrb.mxu1 %v2054_v19  ;;  %v2696_v18 = vld [vmem:[#allocation10 + $0x58] sm:$0xff]  ;;  %v2686_v19 = vld [vmem:[#allocation10 + $0x8] sm:$0xff]  ;;  %v2707_v22 = vld [vmem:[#allocation10 + $0xb0] sm:$0xff] }
  0x57   :  { %653 = vmatpush.bf16.msrb.mxu2 %v1930_v20  ;;  %v2708_v20 = vld [vmem:[#allocation10 + $0xb8] sm:$0xff]  ;;  %v2693_v23 = vld [vmem:[#allocation10 + $0x40] sm:$0xff]  ;;  %v2706_v25 = vld [vmem:[#allocation10 + $0xa8] sm:$0xff] }
  0x58   :  { %667 = vmatpush.bf16.msrb.mxu3 %v2058_v24  ;;  %v2716_v24 = vld [vmem:[#allocation10 + $0xf8] sm:$0xff]  ;;  %v2715_v26 = vld [vmem:[#allocation10 + $0xf0] sm:$0xff]  ;;  %v2705_v27 = vld [vmem:[#allocation10 + $0xa0] sm:$0xff] }
  0x59   :  { %626 = vmatpush.bf16.msrb.mxu0 %v1910_v30  ;;  %v3222_v28 = vld [vmem:[#allocation8] sm:$0xf]  ;;  %v2714_v29 = vld [vmem:[#allocation10 + $0xe8] sm:$0xff]  ;;  %v2703_v35 = vld [vmem:[#allocation10 + $0x90] sm:$0xff] }
  0x5a   :  { %640 = vmatpush.bf16.msrb.mxu1 %v2038_v32  ;;  %v2704_v30 = vld [vmem:[#allocation10 + $0x98] sm:$0xff]  ;;  %v228_v31 = vperm.slane %v3222_v28, 0  ;;  %v229_v37 = vperm.slane %v3222_v28, 1  ;;  %v2702_v41 = vld [vmem:[#allocation10 + $0x88] sm:$0xff]  ;;  %v2711_v45 = vld [vmem:[#allocation10 + $0xd0] sm:$0xff]  ;;  %v230_v2 = vperm.slane %v3222_v28, 2 }
  0x5b   :  { %654 = vmatpush.bf16.msrb.mxu2 %v1914_v33  ;;  %v2713_v33 = vld [vmem:[#allocation10 + $0xe0] sm:$0xff]  ;;  %v2712_v38 = vld [vmem:[#allocation10 + $0xd8] sm:$0xff]  ;;  %v2710_v53 = vld [vmem:[#allocation10 + $0xc8] sm:$0xff] }
  0x5c   :  { %668 = vmatpush.bf16.msrb.mxu3 %v2042_v36 }
  0x5d   :  { %627 = vmatpush.bf16.msrb.mxu0 %v1894_v42 }
  0x5e   :  { %641 = vmatpush.bf16.msrb.mxu1 %v2022_v43 }
  0x5f   :  { %655 = vmatpush.bf16.msrb.mxu2 %v1898_v44 }
  0x60   :  { %669 = vmatpush.bf16.msrb.mxu3 %v2026_v48  ;;  %v2701_v48 = vld [vmem:[#allocation10 + $0x80] sm:$0xff] }
  0x61   :  { %628 = vmatpush.bf16.msrb.mxu0 %v1878_v56 }
  0x62   :  { %642 = vmatpush.bf16.msrb.mxu1 %v2006_v57 }
  0x63   :  { %656 = vmatpush.bf16.msrb.mxu2 %v1882_v58 }
  0x64   :  { %670 = vmatpush.bf16.msrb.mxu3 %v2010_v62  ;;  %v2709_v62 = vld [vmem:[#allocation10 + $0xc0] sm:$0xff] }
  0x65   :  { %629 = vmatpush.bf16.msrb.mxu0 %v1862_v4 }
  0x66   :  { %643 = vmatpush.bf16.msrb.mxu1 %v1990_v5 }
  0x67   :  { %657 = vmatpush.bf16.msrb.mxu2 %v1866_v6  ;;  %v231_v6 = vperm.slane %v3222_v28, 3  ;;  %v2357_v28 = vld [vmem:[#allocation13 + $0xe8] sm:$0xf] }
  0x68   :  { %671 = vmatpush.bf16.msrb.mxu3 %v1994_v7  ;;  %630 = vmatmul.bf16.vlgmr.msrb.gmra.mxu0 %v3210_v51 }
  0x69   :  { %950 = vmatpush.bf16.msra.mxu0 %v2692_v8  ;;  %644 = vmatmul.bf16.vlgmr.msrb.gmra.mxu1 %v3212_v55 }
  0x6a   :  { %964 = vmatpush.bf16.msra.mxu1 %v2700_v9  ;;  %658 = vmatmul.bf16.vlgmr.msrb.gmra.mxu2 %v3210_v51  ;;  %v2695_v51 = vld [vmem:[#allocation10 + $0x50] sm:$0xff] }
  0x6b   :  { %672 = vmatmul.bf16.vlgmr.msrb.gmra.mxu3 %v3212_v55  ;;  %v2685_v55 = vld [vmem:[#allocation10] sm:$0xff]  ;;  %978 = vmatpush.bf16.msra.mxu2 %v2708_v20 }
  0x6c   :  { %992 = vmatpush.bf16.msra.mxu3 %v2716_v24  ;;  %v2747_v24 = vld [vmem:[#allocation13 + $0xec] sm:$0xf0] }
  0x6d   :  { %951 = vmatpush.bf16.msra.mxu0 %v2691_v10 }
  0x6e   :  { %965 = vmatpush.bf16.msra.mxu1 %v2699_v11 }
  0x6f   :  { %979 = vmatpush.bf16.msra.mxu2 %v2707_v22 }
  0x70   :  { %993 = vmatpush.bf16.msra.mxu3 %v2715_v26 }
  0x71   :  { %952 = vmatpush.bf16.msra.mxu0 %v2690_v12 }
  0x72   :  { %966 = vmatpush.bf16.msra.mxu1 %v2698_v13 }
  0x73   :  { %980 = vmatpush.bf16.msra.mxu2 %v2706_v25  ;;  %v2745_v25 = vld [vmem:[#allocation13 + $0xe4] sm:$0xf] }
  0x74   :  { %994 = vmatpush.bf16.msra.mxu3 %v2714_v29  ;;  %v2748_v29 = vld [vmem:[#allocation13 + $0xf4] sm:$0xf0] }
  0x75   :  { %953 = vmatpush.bf16.msra.mxu0 %v2689_v14 }
  0x76   :  { %967 = vmatpush.bf16.msra.mxu1 %v2697_v16 }
  0x77   :  { %981 = vmatpush.bf16.msra.mxu2 %v2705_v27  ;;  %v2351_v27 = vld [vmem:[#allocation13 + $0xf0] sm:$0xf0] }
  0x78   :  { %995 = vmatpush.bf16.msra.mxu3 %v2713_v33  ;;  %v2359_v33 = vld [vmem:[#allocation13 + $0xf8] sm:$0xf0] }
  0x79   :  { %954 = vmatpush.bf16.msra.mxu0 %v2688_v15 }
  0x7a   :  { %968 = vmatpush.bf16.msra.mxu1 %v2696_v18 }
  0x7b   :  { %982 = vmatpush.bf16.msra.mxu2 %v2704_v30  ;;  %v2354_v30 = vor.u32 %v2745_v25, %v2351_v27  ;;  %v2728_v25 = vld [vmem:[#allocation13 + $0x54] sm:$0xf0] }
  0x7c   :  { %996 = vmatpush.bf16.msra.mxu3 %v2712_v38 }
  0x7d   :  { %955 = vmatpush.bf16.msra.mxu0 %v2687_v17 }
  0x7e   :  { %969 = vmatpush.bf16.msra.mxu1 %v2695_v51 }
  0x7f   :  { %983 = vmatpush.bf16.msra.mxu2 %v2703_v35  ;;  %v2333_v35 = vld [vmem:[#allocation13 + $0xc0] sm:$0xf] }
  0x80   :  { %997 = vmatpush.bf16.msra.mxu3 %v2711_v45  ;;  %v2343_v45 = vld [vmem:[#allocation13 + $0xd8] sm:$0xf0] }
  0x81   :  { %956 = vmatpush.bf16.msra.mxu0 %v2686_v19 }
  0x82   :  { %970 = vmatpush.bf16.msra.mxu1 %v2694_v21 }
  0x83   :  { %984 = vmatpush.bf16.msra.mxu2 %v2702_v41  ;;  %v2744_v41 = vld [vmem:[#allocation13 + $0xd4] sm:$0xf0] }
  0x84   :  { %998 = vmatpush.bf16.msra.mxu3 %v2710_v53  ;;  %v2325_v53 = vld [vmem:[#allocation13 + $0xa8] sm:$0xf] }
  0x85   :  { %957 = vmatpush.bf16.msra.mxu0 %v2685_v55 }
  0x86   :  { %971 = vmatpush.bf16.msra.mxu1 %v2693_v23  ;;  %v2349_v23 = vld [vmem:[#allocation13 + $0xe0] sm:$0xf] }
  0x87   :  { %985 = vmatpush.bf16.msra.mxu2 %v2701_v48  ;;  %v2350_v26 = vor.u32 %v2747_v24, %v2349_v23  ;;  %v2739_v48 = vld [vmem:[#allocation13 + $0xac] sm:$0xf0]  ;;  %v2271_v23 = vld [vmem:[#allocation13 + $0x50] sm:$0xf0]  ;;  %v2277_v24 = vld [vmem:[#allocation13 + $0x48] sm:$0xf] }
  0x88   :  { %999 = vmatpush.bf16.msra.mxu3 %v2709_v62  ;;  %v2735_v62 = vld [vmem:[#allocation13 + $0x8c] sm:$0xf0]  ;;  %v2278_v27 = vor.u32 %v2728_v25, %v2277_v24  ;;  %v2794_v24 = vld [vmem:[#allocation14 + $0x164] sm:$0xf0] }
  0x89   :  { %1228 = vmatpush.bf16.msrb.mxu0 %v2350_v26 }
  0x8a   :  { %1242 = vmatpush.bf16.msrb.mxu1 %v2354_v30 }
  0xc5   :  { %v575_v32 = vpop.f32.mrf.mxu0 }
  0xc6   :  { %v589_v34 = vpop.f32.mrf.mxu1  ;;  %v576_v36 = vadd.f32 %v575_v32, %v228_v31  ;;  %v2746_v32 = vld [vmem:[#allocation13 + $0xec] sm:$0xf] }
  0xc8   :  { %v590_v42 = vadd.f32 %v589_v34, %v576_v36  ;;  %v2362_v34 = vor.u32 %v2746_v32, %v2359_v33  ;;  %v2743_v36 = vld [vmem:[#allocation13 + $0xcc] sm:$0xf0]  ;;  %v2721_v33 = vld [vmem:[#allocation13 + $0x24] sm:$0xf] }
  0xc9   :  { %v2334_v38 = vor.u32 %v2743_v36, %v2333_v35  ;;  %v2723_v32 = vld [vmem:[#allocation13 + $0x2c] sm:$0xf0]  ;;  %v2255_v35 = vld [vmem:[#allocation13 + $0x30] sm:$0xf0]  ;;  %v2261_v36 = vld [vmem:[#allocation13 + $0x28] sm:$0xf] }
  0xca   :  { %v678_v49 = vmax.f32 %v590_v42, 0.0  ;;  %1270 = vmatpush.bf16.msrb.mxu3 %v2362_v34 }
  0xcb   :  { %1229 = vmatpush.bf16.msrb.mxu0 %v2334_v38  ;;  %v2258_v38 = vor.u32 %v2721_v33, %v2255_v35  ;;  %v2397_v33 = vld [vmem:[#allocation14 + $0x40] sm:$0xf] }
  0xcd   :  { %v603_v39 = vpop.f32.mrf.mxu2  ;;  %v577_v44 = vpop.f32.mrf.mxu0 }
  0xce   :  { %v617_v40 = vpop.f32.mrf.mxu3  ;;  %v604_v43 = vadd.f32 %v603_v39, %v229_v37  ;;  %v578_v46 = vadd.f32 %v577_v44, %v228_v31  ;;  %v591_v47 = vpop.f32.mrf.mxu1  ;;  %v2358_v31 = vor.u32 %v2748_v29, %v2357_v28  ;;  %v2335_v39 = vld [vmem:[#allocation13 + $0xd0] sm:$0xf0]  ;;  %v2742_v44 = vld [vmem:[#allocation13 + $0xcc] sm:$0xf]  ;;  %v2279_v29 = vld [vmem:[#allocation13 + $0x58] sm:$0xf0] }
  0xcf   :  { %v2726_v28 = vld [vmem:[#allocation13 + $0x4c] sm:$0xf] }
  0xd0   :  { %v592_v50 = vadd.f32 %v591_v47, %v578_v46  ;;  %v618_v52 = vadd.f32 %v617_v40, %v604_v43  ;;  %1256 = vmatpush.bf16.msrb.mxu2 %v2358_v31  ;;  %v2341_v40 = vld [vmem:[#allocation13 + $0xc8] sm:$0xf]  ;;  %v2346_v46 = vor.u32 %v2742_v44, %v2343_v45  ;;  %v2317_v47 = vld [vmem:[#allocation13 + $0xa0] sm:$0xf]  ;;  %v2282_v30 = vor.u32 %v2726_v28, %v2279_v29 }
  0xd1   :  { %v2342_v43 = vor.u32 %v2744_v41, %v2341_v40  ;;  %v2253_v31 = vld [vmem:[#allocation13 + $0x20] sm:$0xf]  ;;  %v2722_v40 = vld [vmem:[#allocation13 + $0x2c] sm:$0xf]  ;;  %v2263_v41 = vld [vmem:[#allocation13 + $0x38] sm:$0xf0] }
  0xd2   :  { %v682_v54 = vmax.f32 %v592_v50, 0.0  ;;  %v679_v60 = vmax.f32 %v618_v52, 0.0  ;;  %1271 = vmatpush.bf16.msrb.mxu3 %v2346_v46  ;;  %v2318_v50 = vor.u32 %v2739_v48, %v2317_v47  ;;  %v2319_v52 = vld [vmem:[#allocation13 + $0xb0] sm:$0xf0]  ;;  %v2254_v34 = vor.u32 %v2723_v32, %v2253_v31  ;;  %v2237_v45 = vld [vmem:[#allocation13] sm:$0xf] }
  0xd3   :  { %v2719_v46 = vld [vmem:[#allocation13 + $0xc] sm:$0xf0]  ;;  %v2717_v47 = vld [vmem:[#allocation13 + $0x4] sm:$0xf]  ;;  %v2810_v28 = vld [vmem:[#allocation14 + $0x1e4] sm:$0xf0] }
  0xd4   :  { %v686_v59 = vpack.c.bf16 %v682_v54, %v678_v49  ;;  %1257 = vmatpush.bf16.msrb.mxu2 %v2342_v43  ;;  %v2737_v49 = vld [vmem:[#allocation13 + $0xa4] sm:$0xf]  ;;  %1230 = vmatpush.bf16.msrb.mxu0 %v2318_v50  ;;  %v2266_v43 = vor.u32 %v2722_v40, %v2263_v41  ;;  %v2238_v48 = vor.u32 %v2719_v46, %v2237_v45  ;;  %v2245_v50 = vld [vmem:[#allocation13 + $0x8] sm:$0xf] }
  0xd5   :  { %v605_v56 = vpop.f32.mrf.mxu2  ;;  %v2322_v54 = vor.u32 %v2737_v49, %v2319_v52  ;;  %v2239_v49 = vld [vmem:[#allocation13 + $0x10] sm:$0xf0]  ;;  %v2720_v52 = vld [vmem:[#allocation13 + $0x14] sm:$0xf0]  ;;  %v2774_v41 = vld [vmem:[#allocation14 + $0xc4] sm:$0xf0] }
  0xd6   :  { %v606_v57 = vadd.f32 %v605_v56, %v229_v37  ;;  %v619_v58 = vpop.f32.mrf.mxu3  ;;  %958 = vmatmul.bf16.vlgmr.msra.gmra.mxu0 %v686_v59  ;;  %v2741_v37 = vld [vmem:[#allocation13 + $0xc4] sm:$0xf]  ;;  %v2740_v56 = vld [vmem:[#allocation13 + $0xb4] sm:$0xf0] }
  0xd7   :  { %v2338_v42 = vor.u32 %v2741_v37, %v2335_v39  ;;  %v2326_v59 = vor.u32 %v2740_v56, %v2325_v53  ;;  %v2724_v37 = vld [vmem:[#allocation13 + $0x34] sm:$0xf0]  ;;  %v2246_v56 = vor.u32 %v2720_v52, %v2245_v50  ;;  %v2525_v50 = vld [vmem:[#allocation14 + $0x140] sm:$0xf]  ;;  %v2790_v52 = vld [vmem:[#allocation14 + $0x144] sm:$0xf0] }
  0xd8   :  { %v620_v61 = vadd.f32 %v619_v58, %v606_v57  ;;  %v2738_v57 = vld [vmem:[#allocation13 + $0xac] sm:$0xf]  ;;  %v2327_v58 = vld [vmem:[#allocation13 + $0xb8] sm:$0xf0]  ;;  %v2262_v39 = vor.u32 %v2724_v37, %v2261_v36  ;;  %v2461_v37 = vld [vmem:[#allocation14 + $0xc0] sm:$0xf] }
  0xd9   :  { %1243 = vmatpush.bf16.msrb.mxu1 %v2338_v42  ;;  %1258 = vmatpush.bf16.msrb.mxu2 %v2326_v59  ;;  %v3228_v42 = vld [vmem:[#allocation11] ss:$0 sm:$0xff] }
  0xda   :  { %v683_v63 = vmax.f32 %v620_v61, 0.0  ;;  %v2301_v61 = vld [vmem:[#allocation13 + $0x80] sm:$0xf] }
  0xdc   :  { %v687_v0 = vpack.c.bf16 %v683_v63, %v679_v60  ;;  %v2330_v60 = vor.u32 %v2738_v57, %v2327_v58  ;;  %v2733_v63 = vld [vmem:[#allocation13 + $0x84] sm:$0xf]  ;;  %v2718_v57 = vld [vmem:[#allocation13 + $0xc] sm:$0xf]  ;;  %v2247_v58 = vld [vmem:[#allocation13 + $0x18] sm:$0xf0] }
  0xdd   :  { %1244 = vmatpush.bf16.msrb.mxu1 %v2322_v54  ;;  %v2242_v54 = vor.u32 %v2717_v47, %v2239_v49  ;;  %v2389_v49 = vld [vmem:[#allocation14 + $0x30] sm:$0xf] }
  0xde   :  { %972 = vmatmul.bf16.vlgmr.msra.gmra.mxu1 %v687_v0  ;;  %1272 = vmatpush.bf16.msrb.mxu3 %v2330_v60  ;;  %v2302_v0 = vor.u32 %v2735_v62, %v2301_v61  ;;  %v2250_v60 = vor.u32 %v2718_v57, %v2247_v58  ;;  %v2421_v62 = vld [vmem:[#allocation14 + $0x70] sm:$0xf]  ;;  %v2589_v57 = vld [vmem:[#allocation14 + $0x1c0] sm:$0xf]  ;;  %v2806_v58 = vld [vmem:[#allocation14 + $0x1c4] sm:$0xf0] }
  0xe0   :  { %1231 = vmatpush.bf16.msrb.mxu0 %v2302_v0  ;;  %v2485_v0 = vld [vmem:[#allocation14 + $0xf0] sm:$0xf] }
  0xe5   :  { %v631_v1 = vpop.f32.mrf.mxu0 }
  0xe6   :  { %v645_v3 = vpop.f32.mrf.mxu1  ;;  %v632_v4 = vadd.f32 %v631_v1, %v230_v2  ;;  %v2303_v1 = vld [vmem:[#allocation13 + $0x90] sm:$0xf0] }
  0xe8   :  { %v646_v9 = vadd.f32 %v645_v3, %v632_v4  ;;  %v2306_v3 = vor.u32 %v2733_v63, %v2303_v1  ;;  %v2736_v4 = vld [vmem:[#allocation13 + $0x94] sm:$0xf0] }
  0xe9   :  { %v2764_v63 = vld [vmem:[#allocation14 + $0x74] sm:$0xf0] }
  0xea   :  { %v680_v14 = vmax.f32 %v646_v9, 0.0  ;;  %1245 = vmatpush.bf16.msrb.mxu1 %v2306_v3  ;;  %v2285_v9 = vld [vmem:[#allocation13 + $0x60] sm:$0xf]  ;;  %v2780_v3 = vld [vmem:[#allocation14 + $0xf4] sm:$0xf0] }
  0xed   :  { %v659_v5 = vpop.f32.mrf.mxu2  ;;  %v633_v8 = vpop.f32.mrf.mxu0 }
  0xee   :  { %v673_v7 = vpop.f32.mrf.mxu3  ;;  %v634_v10 = vadd.f32 %v633_v8, %v230_v2  ;;  %v647_v11 = vpop.f32.mrf.mxu1  ;;  %v660_v13 = vadd.f32 %v659_v5, %v231_v6  ;;  %v2309_v2 = vld [vmem:[#allocation13 + $0x88] sm:$0xf]  ;;  %v2734_v5 = vld [vmem:[#allocation13 + $0x8c] sm:$0xf] }
  0xf0   :  { %v648_v12 = vadd.f32 %v647_v11, %v634_v10  ;;  %v674_v18 = vadd.f32 %v673_v7, %v660_v13  ;;  %v2310_v7 = vor.u32 %v2736_v4, %v2309_v2  ;;  %v2731_v10 = vld [vmem:[#allocation13 + $0x6c] sm:$0xf0]  ;;  %v2729_v11 = vld [vmem:[#allocation13 + $0x64] sm:$0xf]  ;;  %v2287_v13 = vld [vmem:[#allocation13 + $0x70] sm:$0xf0]  ;;  %v2422_v2 = vor.u32 %v2764_v63, %v2421_v62 }
  0xf1   :  { %v2413_v4 = vld [vmem:[#allocation14 + $0x60] sm:$0xf]  ;;  %v2526_v62 = vor.u32 %v2790_v52, %v2525_v50  ;;  %v2590_v63 = vor.u32 %v2806_v58, %v2589_v57  ;;  %v2501_v50 = vld [vmem:[#allocation14 + $0x110] sm:$0xf]  ;;  %v2784_v52 = vld [vmem:[#allocation14 + $0x114] sm:$0xf0] }
  0xf2   :  { %v684_v15 = vmax.f32 %v648_v12, 0.0  ;;  %v681_v20 = vmax.f32 %v674_v18, 0.0  ;;  %1259 = vmatpush.bf16.msrb.mxu2 %v2310_v7  ;;  %v2286_v12 = vor.u32 %v2731_v10, %v2285_v9  ;;  %v2730_v18 = vld [vmem:[#allocation13 + $0x6c] sm:$0xf]  ;;  %v2477_v7 = vld [vmem:[#allocation14 + $0xe0] sm:$0xf] }
  0xf3   :  { %v2549_v9 = vld [vmem:[#allocation14 + $0x170] sm:$0xf]  ;;  %v2761_v58 = vld [vmem:[#allocation14 + $0x64] sm:$0xf] }
  0xf4   :  { %v688_v16 = vpack.c.bf16 %v684_v15, %v680_v14  ;;  %v2293_v14 = vld [vmem:[#allocation13 + $0x68] sm:$0xf]  ;;  %v2732_v15 = vld [vmem:[#allocation13 + $0x74] sm:$0xf0]  ;;  %1232 = vmatpush.bf16.msrb.mxu0 %v2286_v12 }
  0xf5   :  { %v661_v17 = vpop.f32.mrf.mxu2  ;;  %v2796_v12 = vld [vmem:[#allocation14 + $0x174] sm:$0xf0] }
  0xf6   :  { %v662_v19 = vadd.f32 %v661_v17, %v231_v6  ;;  %v675_v51 = vpop.f32.mrf.mxu3  ;;  %986 = vmatmul.bf16.vlgmr.msra.gmra.mxu2 %v688_v16  ;;  %v2311_v6 = vld [vmem:[#allocation13 + $0x98] sm:$0xf0]  ;;  %v2290_v16 = vor.u32 %v2729_v11, %v2287_v13  ;;  %v2294_v17 = vor.u32 %v2732_v15, %v2293_v14  ;;  %v2613_v13 = vld [vmem:[#allocation14 + $0x1f0] sm:$0xf]  ;;  %v2812_v14 = vld [vmem:[#allocation14 + $0x1f4] sm:$0xf0] }
  0xf7   :  { %v2314_v8 = vor.u32 %v2734_v5, %v2311_v6  ;;  %v2762_v5 = vld [vmem:[#allocation14 + $0x64] sm:$0xf0]  ;;  %v2486_v6 = vor.u32 %v2780_v3, %v2485_v0  ;;  %v2517_v0 = vld [vmem:[#allocation14 + $0x130] sm:$0xf] }
  0xf8   :  { %v676_v55 = vadd.f32 %v675_v51, %v662_v19  ;;  %v2295_v19 = vld [vmem:[#allocation13 + $0x78] sm:$0xf0]  ;;  %1246 = vmatpush.bf16.msrb.mxu1 %v2290_v16  ;;  %1260 = vmatpush.bf16.msrb.mxu2 %v2294_v17  ;;  %v2414_v11 = vor.u32 %v2762_v5, %v2413_v4  ;;  %v2581_v4 = vld [vmem:[#allocation14 + $0x1b0] sm:$0xf]  ;;  %v2804_v5 = vld [vmem:[#allocation14 + $0x1b4] sm:$0xf0] }
  0xf9   :  { %1273 = vmatpush.bf16.msrb.mxu3 %v2314_v8  ;;  %v2298_v51 = vor.u32 %v2730_v18, %v2295_v19  ;;  %v2778_v8 = vld [vmem:[#allocation14 + $0xe4] sm:$0xf0]  ;;  %v2550_v18 = vor.u32 %v2796_v12, %v2549_v9  ;;  %v2614_v19 = vor.u32 %v2812_v14, %v2613_v13  ;;  %v2445_v12 = vld [vmem:[#allocation14 + $0xa0] sm:$0xf] }
  0xfa   :  { %v685_v21 = vmax.f32 %v676_v55, 0.0  ;;  %v2269_v55 = vld [vmem:[#allocation13 + $0x40] sm:$0xf]  ;;  %v2478_v17 = vor.u32 %v2778_v8, %v2477_v7  ;;  %v2754_v9 = vld [vmem:[#allocation14 + $0x24] sm:$0xf0] }
  0xfb   :  { %v2381_v8 = vld [vmem:[#allocation14 + $0x20] sm:$0xf]  ;;  %v2770_v13 = vld [vmem:[#allocation14 + $0xa4] sm:$0xf0] }
  0xfc   :  { %v689_v22 = vpack.c.bf16 %v685_v21, %v681_v20  ;;  %v2727_v20 = vld [vmem:[#allocation13 + $0x4c] sm:$0xf0]  ;;  %v2725_v21 = vld [vmem:[#allocation13 + $0x44] sm:$0xf]  ;;  %1261 = vmatpush.bf16.msrb.mxu2 %v2278_v27  ;;  %v2605_v27 = vld [vmem:[#allocation14 + $0x1e0] sm:$0xf] }
  0xfd   :  { %1274 = vmatpush.bf16.msrb.mxu3 %v2298_v51  ;;  %v2274_v26 = vor.u32 %v2725_v21, %v2271_v23  ;;  %v2405_v51 = vld [vmem:[#allocation14 + $0x50] sm:$0xf]  ;;  %v2541_v23 = vld [vmem:[#allocation14 + $0x160] sm:$0xf]  ;;  %v2606_v32 = vor.u32 %v2810_v28, %v2605_v27  ;;  %v2768_v27 = vld [vmem:[#allocation14 + $0x94] sm:$0xf0] }
  0xfe   :  { %1000 = vmatmul.bf16.vlgmr.msra.gmra.mxu3 %v689_v22  ;;  %v2270_v22 = vor.u32 %v2727_v20, %v2269_v55  ;;  %v2760_v55 = vld [vmem:[#allocation14 + $0x54] sm:$0xf0]  ;;  %v2469_v20 = vld [vmem:[#allocation14 + $0xd0] sm:$0xf] }
  0xff   :  { %1247 = vmatpush.bf16.msrb.mxu1 %v2274_v26  ;;  %v2542_v26 = vor.u32 %v2794_v24, %v2541_v23  ;;  %v2406_v31 = vor.u32 %v2760_v55, %v2405_v51  ;;  %v2802_v51 = vld [vmem:[#allocation14 + $0x1a4] sm:$0xf0]  ;;  %v2752_v23 = vld [vmem:[#allocation14 + $0x14] sm:$0xf0] }
 0x100   :  { %1233 = vmatpush.bf16.msrb.mxu0 %v2270_v22  ;;  %1262 = vmatpush.bf16.msrb.mxu2 %v2262_v39  ;;  %v2776_v22 = vld [vmem:[#allocation14 + $0xd4] sm:$0xf0] }
 0x101   :  { %1275 = vmatpush.bf16.msrb.mxu3 %v2282_v30  ;;  %v2470_v36 = vor.u32 %v2776_v22, %v2469_v20  ;;  %v2792_v39 = vld [vmem:[#allocation14 + $0x154] sm:$0xf0]  ;;  %v2446_v20 = vor.u32 %v2770_v13, %v2445_v12  ;;  %v2373_v22 = vld [vmem:[#allocation14 + $0x10] sm:$0xf]  ;;  %v2407_v13 = vld [vmem:[#allocation14 + $0x58] sm:$0xf0] }
 0x103   :  { %1248 = vmatpush.bf16.msrb.mxu1 %v2258_v38  ;;  %v2533_v38 = vld [vmem:[#allocation14 + $0x150] sm:$0xf] }
 0x104   :  { %1234 = vmatpush.bf16.msrb.mxu0 %v2254_v34  ;;  %1263 = vmatpush.bf16.msrb.mxu2 %v2246_v56  ;;  %v2758_v34 = vld [vmem:[#allocation14 + $0x44] sm:$0xf0]  ;;  %v2534_v45 = vor.u32 %v2792_v39, %v2533_v38  ;;  %v2756_v56 = vld [vmem:[#allocation14 + $0x34] sm:$0xf0]  ;;  %v2429_v38 = vld [vmem:[#allocation14 + $0x80] sm:$0xf] }
 0x105   :  { %1276 = vmatpush.bf16.msrb.mxu3 %v2266_v43  ;;  %v2597_v43 = vld [vmem:[#allocation14 + $0x1d0] sm:$0xf]  ;;  %v2390_v3 = vor.u32 %v2756_v56, %v2389_v49  ;;  %v2766_v39 = vld [vmem:[#allocation14 + $0x84] sm:$0xf0]  ;;  %v2487_v49 = vld [vmem:[#allocation14 + $0xf8] sm:$0xf0] }
 0x106   :  { %v2800_v56 = vld [vmem:[#allocation14 + $0x194] sm:$0xf0] }
 0x107   :  { %1249 = vmatpush.bf16.msrb.mxu1 %v2242_v54  ;;  %v2462_v54 = vor.u32 %v2774_v41, %v2461_v37  ;;  %v2750_v37 = vld [vmem:[#allocation14 + $0x4] sm:$0xf0] }
 0x108   :  { %1235 = vmatpush.bf16.msrb.mxu0 %v2238_v48  ;;  %1714 = vmatpush.bf16.msra.mxu2 %v2550_v18  ;;  %v2398_v48 = vor.u32 %v2758_v34, %v2397_v33  ;;  %v2786_v18 = vld [vmem:[#allocation14 + $0x124] sm:$0xf0] }
 0x109   :  { %1277 = vmatpush.bf16.msrb.mxu3 %v2250_v60  ;;  %v2453_v60 = vld [vmem:[#allocation14 + $0xb0] sm:$0xf] }
 0x10b   :  { %1700 = vmatpush.bf16.msra.mxu1 %v2486_v6  ;;  %v2814_v6 = vld [vmem:[#allocation5] sm:$0xff]  }
 0x10c   :  { %1686 = vmatpush.bf16.msra.mxu0 %v2422_v2  ;;  %1715 = vmatpush.bf16.msra.mxu2 %v2542_v26  ;;  %v2815_v55 = vunpack.c.l.bf16 %v2814_v6  ;;  %v2437_v26 = vld [vmem:[#allocation14 + $0x90] sm:$0xf]  ;;  %v2816_v28 = vunpack.c.h.bf16 %v2814_v6  ;;  %v2795_v6 = vld [vmem:[#allocation14 + $0x174] sm:$0xf] }
 0x10d   :  { %1728 = vmatpush.bf16.msra.mxu3 %v2614_v19  ;;  %v2573_v19 = vld [vmem:[#allocation14 + $0x1a0] sm:$0xf]  ;;  %v2438_v33 = vor.u32 %v2768_v27, %v2437_v26  ;;  %v2463_v27 = vld [vmem:[#allocation14 + $0xc8] sm:$0xf0] }
 0x10f   :  { %1701 = vmatpush.bf16.msra.mxu1 %v2478_v17  ;;  %v2382_v17 = vor.u32 %v2754_v9, %v2381_v8  ;;  %v2811_v8 = vld [vmem:[#allocation14 + $0x1f4] sm:$0xf] }
 0x110   :  { %1687 = vmatpush.bf16.msra.mxu0 %v2414_v11  ;;  %1716 = vmatpush.bf16.msra.mxu2 %v2534_v45  ;;  %v2763_v45 = vld [vmem:[#allocation14 + $0x74] sm:$0xf] }
 0x111   :  { %1729 = vmatpush.bf16.msra.mxu3 %v2606_v32 }
 0x113   :  { %1702 = vmatpush.bf16.msra.mxu1 %v2470_v36 }
 0x114   :  { %1688 = vmatpush.bf16.msra.mxu0 %v2406_v31  ;;  %1717 = vmatpush.bf16.msra.mxu2 %v2526_v62  ;;  %v2374_v31 = vor.u32 %v2752_v23, %v2373_v22  ;;  %v2479_v62 = vld [vmem:[#allocation14 + $0xe8] sm:$0xf0]  ;;  %v2757_v23 = vld [vmem:[#allocation14 + $0x44] sm:$0xf] }
 0x117   :  { %1703 = vmatpush.bf16.msra.mxu1 %v2462_v54  ;;  %v2565_v54 = vld [vmem:[#allocation14 + $0x190] sm:$0xf] }
 0x118   :  { %1689 = vmatpush.bf16.msra.mxu0 %v2398_v48  ;;  %v2566_v57 = vor.u32 %v2800_v56, %v2565_v54  ;;  %v2519_v54 = vld [vmem:[#allocation14 + $0x138] sm:$0xf0]  ;;  %v2803_v56 = vld [vmem:[#allocation14 + $0x1b4] sm:$0xf] }
 0x11c   :  { %1690 = vmatpush.bf16.msra.mxu0 %v2390_v3  ;;  %v2557_v3 = vld [vmem:[#allocation14 + $0x180] sm:$0xf] }
 0x120   :  { %1691 = vmatpush.bf16.msra.mxu0 %v2382_v17 }
 0x124   :  { %1692 = vmatpush.bf16.msra.mxu0 %v2374_v31  ;;  %v2807_v31 = vld [vmem:[#allocation14 + $0x1d4] sm:$0xf] }
 0x153   :  { %v959_v44 = vpop.f32.mrf.mxu0 }
 0x154   :  { %v960_v59 = vadd.f32 %v3228_v42, %v959_v44  ;;  %v2808_v44 = vld [vmem:[#allocation14 + $0x1d4] sm:$0xf0] }
 0x155   :  { %v2598_v46 = vor.u32 %v2808_v44, %v2597_v43 }
 0x157   :  { %1730 = vmatpush.bf16.msra.mxu3 %v2598_v46  ;;  %v2423_v46 = vld [vmem:[#allocation14 + $0x78] sm:$0xf0] }
 0x158   :  { %v2426_v48 = vor.u32 %v2763_v45, %v2423_v46  ;;  %v2591_v45 = vld [vmem:[#allocation14 + $0x1c8] sm:$0xf0] }
 0x15b   :  { %v973_v53 = vpop.f32.mrf.mxu1  ;;  %v961_v15 = vpop.f32.mrf.mxu0  ;;  %1731 = vmatpush.bf16.msra.mxu3 %v2590_v63  ;;  %v2493_v63 = vld [vmem:[#allocation14 + $0x100] sm:$0xf] }
 0x15c   :  { %v974_v1 = vadd.f32 %v973_v53, %v960_v59  ;;  %v962_v29 = vadd.f32 %v3228_v42, %v961_v15  ;;  %v2582_v15 = vor.u32 %v2804_v5, %v2581_v4  ;;  %v2798_v4 = vld [vmem:[#allocation14 + $0x184] sm:$0xf0] }
 0x15d   :  { %v2558_v5 = vor.u32 %v2798_v4, %v2557_v3 }
 0x15f   :  { %1732 = vmatpush.bf16.msra.mxu3 %v2582_v15  ;;  %v2471_v15 = vld [vmem:[#allocation14 + $0xd8] sm:$0xf0] }
 0x163   :  { %v975_v25 = vpop.f32.mrf.mxu1 }
 0x164   :  { %v976_v40 = vadd.f32 %v975_v25, %v962_v29 }
 0x179   :  { %v987_v61 = vpop.f32.mrf.mxu2 }
 0x17a   :  { %v988_v10 = vadd.f32 %v987_v61, %v974_v1  ;;  %v2772_v61 = vld [vmem:[#allocation14 + $0xb4] sm:$0xf0] }
 0x17b   :  { %v2788_v1 = vld [vmem:[#allocation14 + $0x134] sm:$0xf0]  ;;  %v2454_v7 = vor.u32 %v2772_v61, %v2453_v60  ;;  %v2777_v60 = vld [vmem:[#allocation14 + $0xe4] sm:$0xf] }
 0x17c   :  { %v2518_v14 = vor.u32 %v2788_v1, %v2517_v0  ;;  %v2782_v0 = vld [vmem:[#allocation14 + $0x104] sm:$0xf0]  ;;  %v2482_v1 = vor.u32 %v2777_v60, %v2479_v62  ;;  %v2751_v60 = vld [vmem:[#allocation14 + $0x14] sm:$0xf] }
 0x17d   :  { %1704 = vmatpush.bf16.msra.mxu1 %v2454_v7  ;;  %v2551_v7 = vld [vmem:[#allocation14 + $0x178] sm:$0xf0]  ;;  %v2767_v62 = vld [vmem:[#allocation14 + $0x94] sm:$0xf] }
 0x17e   :  { %1718 = vmatpush.bf16.msra.mxu2 %v2518_v14  ;;  %v2554_v9 = vor.u32 %v2795_v6, %v2551_v7  ;;  %v2775_v14 = vld [vmem:[#allocation14 + $0xd4] sm:$0xf]  ;;  %v2575_v6 = vld [vmem:[#allocation14 + $0x1a8] sm:$0xf0]  ;;  %v2749_v7 = vld [vmem:[#allocation14 + $0x4] sm:$0xf] }
 0x17f   :  { %v2474_v17 = vor.u32 %v2775_v14, %v2471_v15  ;;  %v2783_v14 = vld [vmem:[#allocation14 + $0x114] sm:$0xf]  ;;  %v2503_v15 = vld [vmem:[#allocation14 + $0x118] sm:$0xf0] }
 0x181   :  { %v1001_v16 = vpop.f32.mrf.mxu3  ;;  %v989_v35 = vpop.f32.mrf.mxu2  ;;  %1705 = vmatpush.bf16.msra.mxu1 %v2446_v20  ;;  %v2607_v20 = vld [vmem:[#allocation14 + $0x1e8] sm:$0xf0] }
 0x182   :  { %v3231_v21 = vadd.f32 %v1001_v16, %v988_v10  ;;  %v990_v47 = vadd.f32 %v989_v35, %v976_v40  ;;  %v1012_v10 = vlaneseq  ;;  %v2509_v16 = vld [vmem:[#allocation14 + $0x120] sm:$0xf] }
 0x183   :  { %v2510_v29 = vor.u32 %v2786_v18, %v2509_v16  ;;  %v2365_v35 = vld [vmem:[#allocation14] sm:$0xf]  ;;  %v2793_v18 = vld [vmem:[#allocation14 + $0x164] sm:$0xf] }
 0x184   :  { %1006 = vst [vmem:[#allocation17] sm:$0xff] %v3231_v21  ;;  %v1015_v30 = vmul.f32 0.5, %v3231_v21  ;;  %v1013_v25 = vand.u32 127, %v1012_v10  ;;  %v2366_v44 = vor.u32 %v2750_v37, %v2365_v35  ;;  %v2615_v10 = vld [vmem:[#allocation14 + $0x1f8] sm:$0xf0] }
 0x185   :  { %1719 = vmatpush.bf16.msra.mxu2 %v2510_v29  ;;  %1706 = vmatpush.bf16.msra.mxu1 %v2438_v33  ;;  %v2618_v12 = vor.u32 %v2811_v8, %v2615_v10  ;;  %v2791_v29 = vld [vmem:[#allocation14 + $0x154] sm:$0xf]  ;;  %v2599_v33 = vld [vmem:[#allocation14 + $0x1d8] sm:$0xf0]  ;;  %v2765_v10 = vld [vmem:[#allocation14 + $0x84] sm:$0xf] }
 0x186   :  { %v1017_v42 = vmul.f32 1.442695, %v1015_v30  ;;  %v2574_v30 = vor.u32 %v2802_v51, %v2573_v19  ;;  %vm1014_vm0 = vcmp.lt.s32.totalorder %v1013_v25, 16  ;;  %1693 = vmatpush.bf16.msra.mxu0 %v2366_v44  ;;  %v2543_v19 = vld [vmem:[#allocation14 + $0x168] sm:$0xf0] }
 0x187   :  { %v2809_v51 = vld [vmem:[#allocation14 + $0x1e4] sm:$0xf]  ;;  %v2755_v35 = vld [vmem:[#allocation14 + $0x34] sm:$0xf] }
 0x188   :  { %2834 = vpow2.f32 %v1017_v42  ;;  %1733 = vmatpush.bf16.msra.mxu3 %v2574_v30  ;;  %v2430_v42 = vor.u32 %v2766_v39, %v2429_v38  ;;  %v2610_v22 = vor.u32 %v2809_v51, %v2607_v20  ;;  %v2773_v25 = vld [vmem:[#allocation14 + $0xc4] sm:$0xf]  ;;  %v2535_v30 = vld [vmem:[#allocation14 + $0x158] sm:$0xf0]  ;;  %v2771_v37 = vld [vmem:[#allocation14 + $0xb4] sm:$0xf] }
 0x189   :  { %v1003_v53 = vpop.f32.mrf.mxu3  ;;  %v2455_v39 = vld [vmem:[#allocation14 + $0xb8] sm:$0xf0]  ;;  %v2805_v44 = vld [vmem:[#allocation14 + $0x1c4] sm:$0xf] }
 0x18a   :  { %v3236_v59 = vadd.f32 %v1003_v53, %v990_v47  ;;  %1707 = vmatpush.bf16.msra.mxu1 %v2430_v42  ;;  %v2779_v47 = vld [vmem:[#allocation14 + $0xf4] sm:$0xf]  ;;  %v2502_v53 = vor.u32 %v2784_v52, %v2501_v50  ;;  %v2594_v46 = vor.u32 %v2805_v44, %v2591_v45  ;;  %v2447_v52 = vld [vmem:[#allocation14 + $0xa8] sm:$0xf0]  ;;  %v2781_v51 = vld [vmem:[#allocation14 + $0x104] sm:$0xf] }
 0x18b   :  { %v2797_v20 = vld [vmem:[#allocation14 + $0x184] sm:$0xf] }
 0x18c   :  { %1007 = vst [vmem:[#allocation17 + $0x8] sm:$0xff] %v3236_v59  ;;  %v1016_v2 = vmul.f32 0.5, %v3236_v59  ;;  %1720 = vmatpush.bf16.msra.mxu2 %v2502_v53  ;;  %1734 = vmatpush.bf16.msra.mxu3 %v2566_v57  ;;  %v2787_v53 = vld [vmem:[#allocation14 + $0x134] sm:$0xf] }
 0x18d   :  { %v2522_v57 = vor.u32 %v2787_v53, %v2519_v54 }
 0x18e   :  { %v1019_v11 = vmul.f32 1.442695, %v1016_v2  ;;  %v2835_v24 = vpop.eup %2834  ;;  %v2494_v2 = vor.u32 %v2782_v0, %v2493_v63  ;;  %v2439_v0 = vld [vmem:[#allocation14 + $0x98] sm:$0xf0] }
 0x18f   :  { %v1021_v32 = vmul.f32 %v2835_v24, %v2815_v55  ;;  %v2546_v55 = vor.u32 %v2793_v18, %v2543_v19  ;;  %v2399_v24 = vld [vmem:[#allocation14 + $0x48] sm:$0xf0]  ;;  %v2442_v3 = vor.u32 %v2767_v62, %v2439_v0  ;;  %v2506_v18 = vor.u32 %v2783_v14, %v2503_v15 }
 0x190   :  { %2836 = vpow2.f32 %v1019_v11  ;;  %1721 = vmatpush.bf16.msra.mxu2 %v2494_v2  ;;  %v2759_v11 = vld [vmem:[#allocation14 + $0x54] sm:$0xf]  ;;  %1735 = vmatpush.bf16.msra.mxu3 %v2558_v5  ;;  %v2402_v26 = vor.u32 %v2757_v23, %v2399_v24  ;;  %v2511_v2 = vld [vmem:[#allocation14 + $0x128] sm:$0xf0]  ;;  %v2801_v5 = vld [vmem:[#allocation14 + $0x1a4] sm:$0xf] }
 0x191   :  { %v1023_v40 = vsel %vm1014_vm0, %v3231_v21, %v1021_v32  ;;  %v2490_v21 = vor.u32 %v2779_v47, %v2487_v49  ;;  %v2410_v16 = vor.u32 %v2759_v11, %v2407_v13  ;;  %v2538_v32 = vor.u32 %v2791_v29, %v2535_v30  ;;  %v2753_v47 = vld [vmem:[#allocation14 + $0x24] sm:$0xf]  ;;  %v2431_v11 = vld [vmem:[#allocation14 + $0x88] sm:$0xf0] }
 0x192   :  { %v2769_v49 = vld [vmem:[#allocation14 + $0xa4] sm:$0xf]  ;;  %v2578_v8 = vor.u32 %v2801_v5, %v2575_v6  ;;  %v2434_v13 = vor.u32 %v2765_v10, %v2431_v11 }
 0x196   :  { %v2837_v34 = vpop.eup %2836 }
 0x197   :  { %v1022_v36 = vmul.f32 %v2837_v34, %v2816_v28  ;;  %v2466_v28 = vor.u32 %v2773_v25, %v2463_v27  ;;  %v2602_v34 = vor.u32 %v2807_v31, %v2599_v33 }
 0x199   :  { %v1024_v41 = vsel %vm1014_vm0, %v3236_v59, %v1022_v36  ;;  %v2415_v59 = vld [vmem:[#allocation14 + $0x68] sm:$0xf0]  ;;  %v2391_v36 = vld [vmem:[#allocation14 + $0x38] sm:$0xf0] }
 0x19a   :  { %v1025_v43 = vpack.c.bf16 %v1024_v41, %v1023_v40  ;;  %v2418_v61 = vor.u32 %v2761_v58, %v2415_v59  ;;  %v2394_v38 = vor.u32 %v2755_v35, %v2391_v36  ;;  %v2458_v40 = vor.u32 %v2771_v37, %v2455_v39  ;;  %v2789_v41 = vld [vmem:[#allocation14 + $0x144] sm:$0xf]  ;;  %v2583_v58 = vld [vmem:[#allocation14 + $0x1b8] sm:$0xf0] }
 0x19b   :  { %v2586_v59 = vor.u32 %v2803_v56, %v2583_v58 }
 0x19c   :  { %1236 = vmatmul.bf16.vlgmr.msrb.gmra.mxu0 %v1025_v43  ;;  %1250 = vmatmul.bf16.vlgmr.msrb.gmra.mxu1 %v1025_v43 }
 0x19d   :  { %1264 = vmatmul.bf16.vlgmr.msrb.gmra.mxu2 %v1025_v43  ;;  %1278 = vmatmul.bf16.vlgmr.msrb.gmra.mxu3 %v1025_v43  ;;  %v2527_v43 = vld [vmem:[#allocation14 + $0x148] sm:$0xf0] }
 0x19e   :  { %1742 = vmatpush.bf16.msrb.mxu0 %v2426_v48  ;;  %1756 = vmatpush.bf16.msrb.mxu1 %v2490_v21  ;;  %v2530_v42 = vor.u32 %v2789_v41, %v2527_v43  ;;  %v2383_v48 = vld [vmem:[#allocation14 + $0x28] sm:$0xf0]  ;;  %v2450_v21 = vor.u32 %v2769_v49, %v2447_v52 }
 0x19f   :  { %1770 = vmatpush.bf16.msrb.mxu2 %v2554_v9  ;;  %1784 = vmatpush.bf16.msrb.mxu3 %v2618_v12  ;;  %v2386_v50 = vor.u32 %v2753_v47, %v2383_v48  ;;  %v2367_v9 = vld [vmem:[#allocation14 + $0x8] sm:$0xf0] }
 0x1a0   :  { %v2370_v12 = vor.u32 %v2749_v7, %v2367_v9 }
 0x1a2   :  { %1743 = vmatpush.bf16.msrb.mxu0 %v2418_v61  ;;  %1757 = vmatpush.bf16.msrb.mxu1 %v2482_v1  ;;  %v2375_v61 = vld [vmem:[#allocation14 + $0x18] sm:$0xf0]  ;;  %v2785_v1 = vld [vmem:[#allocation14 + $0x124] sm:$0xf] }
 0x1a3   :  { %1771 = vmatpush.bf16.msrb.mxu2 %v2546_v55  ;;  %1785 = vmatpush.bf16.msrb.mxu3 %v2610_v22  ;;  %v2378_v63 = vor.u32 %v2751_v60, %v2375_v61  ;;  %v2514_v4 = vor.u32 %v2785_v1, %v2511_v2  ;;  %v2495_v55 = vld [vmem:[#allocation14 + $0x108] sm:$0xf0]  ;;  %v1058_v22 = vld [vmem:[%s3267_s7] sm:$0xf]  ;;  %s3106_s7 = smov [#allocation17]  }
 0x1a4   :  { %v2498_v25 = vor.u32 %v2781_v51, %v2495_v55  ;;  %v1061_v29 = vperm.slane %v1058_v22, 1  ;;  %v1063_v39 = vperm.slane %v1058_v22, 3  ;;  %s1819_s26 = sshll.u32 %s3106_s7, 4  ;;  %v1360_v60 = vld [vmem:[%s3269_s9] sm:$0x3]  ;;  %s3107_s9 = smov [#allocation16]   ;;  %s1820_s26 = int_to_ptr.vmem [resolvable:$true] %s1819_s26 }
 0x1a5   :  { %1827 = dma.vmem_to_hbm [thread:$0]  %s1820_s26, 256, %s1822_s21, [#allocation18], %s3098_s18, %s3098_s18, %s3099_s19   ;;  %v1362_v61 = vperm.slane %v1360_v60, 0  ;;  %v1363_v10 = vperm.slane %v1360_v60, 1 }
 0x1a6   :  { %1744 = vmatpush.bf16.msrb.mxu0 %v2410_v16  ;;  %1758 = vmatpush.bf16.msrb.mxu1 %v2474_v17  ;;  %v2799_v16 = vld [vmem:[#allocation14 + $0x194] sm:$0xf]  ;;  %v2567_v17 = vld [vmem:[#allocation14 + $0x198] sm:$0xf0]  ;;  %s1806_s11 = sshll.u32 %s3107_s9, 4  ;;  %s1807_s11 = int_to_ptr.vmem [resolvable:$true] %s1806_s11 }
 0x1a7   :  { %1772 = vmatpush.bf16.msrb.mxu2 %v2538_v32  ;;  %1786 = vmatpush.bf16.msrb.mxu3 %v2602_v34  ;;  %v2570_v19 = vor.u32 %v2799_v16, %v2567_v17 }
 0x1aa   :  { %1745 = vmatpush.bf16.msrb.mxu0 %v2402_v26  ;;  %1759 = vmatpush.bf16.msrb.mxu1 %v2466_v28  ;;  %v2559_v26 = vld [vmem:[#allocation14 + $0x188] sm:$0xf0]  ;;  %v1060_v28 = vperm.slane %v1058_v22, 0 }
 0x1ab   :  { %1773 = vmatpush.bf16.msrb.mxu2 %v2530_v42  ;;  %1787 = vmatpush.bf16.msrb.mxu3 %v2594_v46  ;;  %v2562_v27 = vor.u32 %v2797_v20, %v2559_v26 }
 0x1ae   :  { %1746 = vmatpush.bf16.msrb.mxu0 %v2394_v38  ;;  %1760 = vmatpush.bf16.msrb.mxu1 %v2458_v40  ;;  %v1062_v38 = vperm.slane %v1058_v22, 2 }
 0x1af   :  { %1774 = vmatpush.bf16.msrb.mxu2 %v2522_v57  ;;  %1788 = vmatpush.bf16.msrb.mxu3 %v2586_v59 }
 0x1b2   :  { %1747 = vmatpush.bf16.msrb.mxu0 %v2386_v50  ;;  %1761 = vmatpush.bf16.msrb.mxu1 %v2450_v21 }
 0x1b3   :  { %1775 = vmatpush.bf16.msrb.mxu2 %v2514_v4  ;;  %1789 = vmatpush.bf16.msrb.mxu3 %v2578_v8 }
 0x1b6   :  { %1748 = vmatpush.bf16.msrb.mxu0 %v2378_v63  ;;  %1762 = vmatpush.bf16.msrb.mxu1 %v2442_v3 }
 0x1b7   :  { %1776 = vmatpush.bf16.msrb.mxu2 %v2506_v18  ;;  %1790 = vmatpush.bf16.msrb.mxu3 %v2570_v19 }
 0x1ba   :  { %1749 = vmatpush.bf16.msrb.mxu0 %v2370_v12  ;;  %1763 = vmatpush.bf16.msrb.mxu1 %v2434_v13 }
 0x1bb   :  { %1777 = vmatpush.bf16.msrb.mxu2 %v2498_v25  ;;  %1791 = vmatpush.bf16.msrb.mxu3 %v2562_v27 }
 0x219   :  { %v1237_v23 = vpop.f32.mrf.mxu0  ;;  %v1251_v24 = vpop.f32.mrf.mxu1 }
 0x21a   :  { %v1238_v30 = vadd.f32 %v1237_v23, %v1060_v28  ;;  %v1252_v31 = vadd.f32 %v1251_v24, %v1061_v29 }
 0x21c   :  { %v1284_v40 = vmax.f32 %v1238_v30, 0.0  ;;  %v1285_v41 = vmax.f32 %v1252_v31, 0.0 }
 0x220   :  { %v1265_v32 = vpop.f32.mrf.mxu2  ;;  %v1279_v33 = vpop.f32.mrf.mxu3 }
 0x221   :  { %v1239_v34 = vpop.f32.mrf.mxu0  ;;  %v1253_v35 = vpop.f32.mrf.mxu1  ;;  %v1266_v46 = vadd.f32 %v1265_v32, %v1062_v38  ;;  %v1280_v47 = vadd.f32 %v1279_v33, %v1063_v39 }
 0x222   :  { %v1240_v36 = vadd.f32 %v1239_v34, %v1060_v28  ;;  %v1254_v37 = vadd.f32 %v1253_v35, %v1061_v29 }
 0x223   :  { %v1286_v21 = vmax.f32 %v1266_v46, 0.0  ;;  %v1287_v53 = vmax.f32 %v1280_v47, 0.0 }
 0x224   :  { %v1288_v43 = vmax.f32 %v1240_v36, 0.0  ;;  %v1289_v44 = vmax.f32 %v1254_v37, 0.0 }
 0x226   :  { %v1292_v42 = vpack.c.bf16 %v1288_v43, %v1284_v40  ;;  %v1293_v45 = vpack.c.bf16 %v1289_v44, %v1285_v41 }
 0x228   :  { %v1267_v48 = vpop.f32.mrf.mxu2  ;;  %v1281_v49 = vpop.f32.mrf.mxu3  ;;  %1694 = vmatmul.bf16.vlgmr.msra.gmra.mxu0 %v1292_v42  ;;  %1708 = vmatmul.bf16.vlgmr.msra.gmra.mxu1 %v1293_v45 }
 0x229   :  { %v1268_v50 = vadd.f32 %v1267_v48, %v1062_v38  ;;  %v1282_v52 = vadd.f32 %v1281_v49, %v1063_v39 }
 0x22b   :  { %v1290_v54 = vmax.f32 %v1268_v50, 0.0  ;;  %v1291_v56 = vmax.f32 %v1282_v52, 0.0 }
 0x22d   :  { %v1294_v57 = vpack.c.bf16 %v1290_v54, %v1286_v21  ;;  %v1295_v58 = vpack.c.bf16 %v1291_v56, %v1287_v53 }
 0x22f   :  { %1722 = vmatmul.bf16.vlgmr.msra.gmra.mxu2 %v1294_v57  ;;  %1736 = vmatmul.bf16.vlgmr.msra.gmra.mxu3 %v1295_v58 }
 0x238   :  { %1750 = vmatmul.bf16.vlgmr.msrb.gmra.mxu0 %v1292_v42  ;;  %1764 = vmatmul.bf16.vlgmr.msrb.gmra.mxu1 %v1293_v45 }
 0x23f   :  { %1778 = vmatmul.bf16.vlgmr.msrb.gmra.mxu2 %v1294_v57  ;;  %1792 = vmatmul.bf16.vlgmr.msrb.gmra.mxu3 %v1295_v58 }
 0x2a5   :  { %v1695_v59 = vpop.f32.mrf.mxu0  ;;  %v1709_v62 = vpop.f32.mrf.mxu1 }
 0x2a6   :  { %v1696_v63 = vadd.f32 %v1695_v59, %v1362_v61 }
 0x2a8   :  { %v1710_v1 = vadd.f32 %v1709_v62, %v1696_v63 }
 0x2ad   :  { %v1697_v0 = vpop.f32.mrf.mxu0  ;;  %v1711_v5 = vpop.f32.mrf.mxu1 }
 0x2ae   :  { %v1698_v6 = vadd.f32 %v1697_v0, %v1362_v61 }
 0x2b0   :  { %v1712_v9 = vadd.f32 %v1711_v5, %v1698_v6 }
 0x2b2   :  { %v1723_v2 = vpop.f32.mrf.mxu2  ;;  %v1737_v3 = vpop.f32.mrf.mxu3 }
 0x2b3   :  { %v1724_v4 = vadd.f32 %v1723_v2, %v1710_v1 }
 0x2b5   :  { %v1738_v7 = vadd.f32 %v1737_v3, %v1724_v4  ;;  %v1751_v8 = vpop.f32.mrf.mxu0  ;;  %v1765_v16 = vpop.f32.mrf.mxu1 }
 0x2b6   :  { %v1752_v14 = vadd.f32 %v1751_v8, %v1363_v10 }
 0x2b7   :  { %1798 = vst [vmem:[#allocation16] sm:$0xff] %v1738_v7 }
 0x2b8   :  { %v1766_v17 = vadd.f32 %v1765_v16, %v1752_v14 }
 0x2ba   :  { %v1725_v11 = vpop.f32.mrf.mxu2  ;;  %v1739_v12 = vpop.f32.mrf.mxu3 }
 0x2bb   :  { %v1726_v13 = vadd.f32 %v1725_v11, %v1712_v9 }
 0x2bd   :  { %v1740_v15 = vadd.f32 %v1739_v12, %v1726_v13  ;;  %v1753_v18 = vpop.f32.mrf.mxu0  ;;  %v1767_v23 = vpop.f32.mrf.mxu1 }
 0x2be   :  { %v1754_v20 = vadd.f32 %v1753_v18, %v1363_v10 }
 0x2bf   :  { %1800 = vst [vmem:[#allocation16 + $0x10] sm:$0xff] %v1740_v15 }
 0x2c0   :  { %v1768_v24 = vadd.f32 %v1767_v23, %v1754_v20 }
 0x2c2   :  { %v1779_v19 = vpop.f32.mrf.mxu2  ;;  %v1793_v51 = vpop.f32.mrf.mxu3 }
 0x2c3   :  { %v1780_v55 = vadd.f32 %v1779_v19, %v1766_v17 }
 0x2c5   :  { %v1794_v22 = vadd.f32 %v1793_v51, %v1780_v55 }
 0x2c7   :  { %1799 = vst [vmem:[#allocation16 + $0x8] sm:$0xff] %v1794_v22 }
 0x2ca   :  { %v1781_v25 = vpop.f32.mrf.mxu2  ;;  %v1795_v27 = vpop.f32.mrf.mxu3 }
 0x2cb   :  { %v1782_v26 = vadd.f32 %v1781_v25, %v1768_v24 }
 0x2cd   :  { %v1796_v28 = vadd.f32 %v1795_v27, %v1782_v26 }
 0x2cf   :  { %1801 = vst [vmem:[#allocation16 + $0x18] sm:$0xff] %v1796_v28 }
 0x2d0   :  { %1814 = dma.vmem_to_hbm [thread:$0]  %s1807_s11, 512, %s1809_s23, [#allocation4], %s3101_s28, %s3101_s28, %s3102_s29  }
 0x2d1   :  { %3088 = dma.done.wait [#allocation4], 512  }
 0x2d2   :  { %3089 = vsyncadd [#allocation4], 4294966784 }
 0x2d3   :  { %3090 = dma.done.wait [#allocation18], 256  }
 0x2d4   :  { %3091 = vsyncadd [#allocation18], 4294967040 }
 0x2d5   :  { %1836 = vsyncpa [#allocation3], 1 }
 0x2d6   :  { %1837 = vsyncpa [#allocation6], 1 }
 0x2d7   :  { %1838 = vsyncpa [#allocation9], 1 }
 0x2d8   :  { %1839 = vsyncpa [#allocation12], 1 }
 0x2d9   :  { %1840 = vsyncpa [#allocation15], 1 }
 0x2da   :  { %1841 = vsyncpa [#allocation4], 1 }
 0x2db   :  { %1842 = vsyncpa [#allocation18], 1 }

</bundles_post_ra>
